<compile_context>
chip_gen: v7x
topology: tpu7x:2x2x1
jax: 0.10.0
libtpu: 0.0.40
codegen_flags: <defaults>
</compile_context>

<pallas_src>
import functools

import jax
import jax.numpy as jnp
from jax.experimental import pallas as pl
from jax.experimental.pallas import tpu as pltpu


# ---------------------------------------------------------------------------
# Pallas kernels
# ---------------------------------------------------------------------------
def _conv_mm_kernel(a_ref, b_ref, bias_ref, o_ref, *, alpha, apply_act):
    """Single-phase conv-as-matmul: o = act(a @ b + bias).  K is NOT tiled
    (full-extent block), so no accumulator scratch / pl.when phases needed."""
    acc = jnp.dot(a_ref[...], b_ref[...], preferred_element_type=jnp.float32)
    acc = acc + bias_ref[...]                       # bias block is [M, 1]
    if apply_act:
        acc = jnp.where(acc >= 0, acc, alpha * acc)  # LeakyReLU(0.2)
    o_ref[...] = acc.astype(o_ref.dtype)


def _fused_final_kernel(a4_ref, b_ref, bias4_ref, w5_ref, bias5_ref, o_ref, *, alpha):
    """d4 (4x4 conv + bias + LeakyReLU) fused with d5 (1x1 conv, Cout=1).
    The full channel dim of d4 is resident, so the 1x1 conv is an on-chip
    channel reduction; only the [1, tn] logits row is stored."""
    h = jnp.dot(a4_ref[...], b_ref[...], preferred_element_type=jnp.float32)
    h = h + bias4_ref[...]
    h = jnp.where(h >= 0, h, alpha * h)
    # d5: per-channel weight column [C4, 1] * h, reduce over channels (sublanes).
    logits = jnp.sum(w5_ref[...] * h, axis=0, keepdims=True) + bias5_ref[...]
    o_ref[...] = logits.astype(o_ref.dtype)


# ---------------------------------------------------------------------------
# Pallas wrappers
# ---------------------------------------------------------------------------
def _round_up(x, m):
    return ((x + m - 1) // m) * m


_VMEM_LIMIT = 32 * 1024 * 1024  # portable budget (v5e/v6e 128 MiB, v7x 64 MiB phys)


def conv_matmul(a, b, bias, *, apply_act, out_dtype=jnp.bfloat16, alpha=0.2,
                tn_pref=1024):
    """act(a @ b + bias[:, None]).

    a    : [M, K]  spectral-normalized conv weights (f32, cast to bf16 here; tiny)
    b    : [K, N]  im2col patches (already bf16), N = batch*OH*OW (lane axis)
    bias : [M]
    Returns out_dtype [M, N]; f32 accumulation on the MXU.
    """
    M, K = a.shape
    K2, N = b.shape
    assert K == K2
    tn = min(tn_pref, _round_up(N, 128))
    Np = _round_up(N, tn)
    if Np != N:                       # pad only N, only when needed
        b = jnp.pad(b, ((0, 0), (0, Np - N)))

    kernel = functools.partial(_conv_mm_kernel, alpha=alpha, apply_act=apply_act)
    out = pl.pallas_call(
        kernel,
        out_shape=jax.ShapeDtypeStruct((M, Np), out_dtype),
        grid_spec=pltpu.PrefetchScalarGridSpec(
            num_scalar_prefetch=0,
            grid=(Np // tn,),
            in_specs=[
                pl.BlockSpec((M, K), lambda j: (0, 0)),     # full-extent weights
                pl.BlockSpec((K, tn), lambda j: (0, j)),    # lane-dense patch tile
                pl.BlockSpec((M, 1), lambda j: (0, 0)),     # bias column
            ],
            out_specs=pl.BlockSpec((M, tn), lambda j: (0, j)),
        ),
        compiler_params=pltpu.CompilerParams(
            dimension_semantics=("parallel",),
            vmem_limit_bytes=_VMEM_LIMIT),
        cost_estimate=pl.CostEstimate(
            flops=2 * M * Np * K,
            transcendentals=0,
            bytes_accessed=2 * (M * K + K * Np)
            + jnp.dtype(out_dtype).itemsize * M * Np),
    )(a.astype(jnp.bfloat16), b.astype(jnp.bfloat16),
      bias.astype(jnp.float32).reshape(M, 1))
    return out[:, :N] if Np != N else out


def fused_final_matmul(a4, b, bias4, w5_col, bias5, *, alpha=0.2, tn_pref=1024):
    """Fused d4+d5: logits[1, N] = w5 @ leaky(a4 @ b + bias4) + bias5."""
    M4, K = a4.shape
    K2, N = b.shape
    assert K == K2
    tn = min(tn_pref, _round_up(N, 128))
    Np = _round_up(N, tn)
    if Np != N:
        b = jnp.pad(b, ((0, 0), (0, Np - N)))

    kernel = functools.partial(_fused_final_kernel, alpha=alpha)
    out = pl.pallas_call(
        kernel,
        out_shape=jax.ShapeDtypeStruct((1, Np), jnp.float32),
        grid_spec=pltpu.PrefetchScalarGridSpec(
            num_scalar_prefetch=0,
            grid=(Np // tn,),
            in_specs=[
                pl.BlockSpec((M4, K), lambda j: (0, 0)),
                pl.BlockSpec((K, tn), lambda j: (0, j)),
                pl.BlockSpec((M4, 1), lambda j: (0, 0)),
                pl.BlockSpec((M4, 1), lambda j: (0, 0)),
                pl.BlockSpec((1, 1), lambda j: (0, 0)),
            ],
            out_specs=pl.BlockSpec((1, tn), lambda j: (0, j)),
        ),
        compiler_params=pltpu.CompilerParams(
            dimension_semantics=("parallel",),
            vmem_limit_bytes=_VMEM_LIMIT),
        cost_estimate=pl.CostEstimate(
            flops=2 * M4 * Np * K + 2 * M4 * Np,
            transcendentals=0,
            bytes_accessed=2 * (M4 * K + K * Np) + 4 * Np),
    )(a4.astype(jnp.bfloat16), b.astype(jnp.bfloat16),
      bias4.astype(jnp.float32).reshape(M4, 1),
      w5_col.astype(jnp.float32).reshape(M4, 1),
      jnp.asarray(bias5, jnp.float32).reshape(1, 1))
    return out[:, :N] if Np != N else out


# ---------------------------------------------------------------------------
# Conv building blocks (glue around the Pallas matmuls)
# ---------------------------------------------------------------------------
def _l2normalize(v, eps=1e-12):
    return v / (jnp.linalg.norm(v) + eps)


def spectral_normalize(w, u):
    """One power iteration exactly as SpectralNorm._update_u_v with
    power_iterations=1: v recomputed from u, sigma = u_new . (W v).  w / sigma."""
    h = w.shape[0]
    w2 = w.reshape(h, -1)
    v = _l2normalize(w2.T @ u)
    u_new = _l2normalize(w2 @ v)
    sigma = u_new @ (w2 @ v)
    return w / sigma


def _im2col_cf(x, kh, kw, sh, sw):
    """x: channel-first [C, Nb, H, W] (already zero-padded, bf16) ->
    patches^T [C*kh*kw, Nb*OH*OW].  K ordering = c*kh*kw + i*kw + j, matching
    weight.reshape(Cout, -1).  No transpose needed in this layout."""
    c, nb, h, w = x.shape
    oh = (h - kh) // sh + 1
    ow = (w - kw) // sw + 1
    cols = []
    for i in range(kh):
        for j in range(kw):
            cols.append(x[:, :, i:i + sh * oh:sh, j:j + sw * ow:sw])  # [C,Nb,OH,OW]
    p = jnp.stack(cols, axis=1)                 # [C, kh*kw, Nb, OH, OW]
    p = p.reshape(c * kh * kw, nb * oh * ow)
    return p, (nb, oh, ow)


def sn_conv_cf(x_cf, params, k, stride, pad, *, apply_act, out_dtype=jnp.bfloat16):
    """SpectralNorm(Conv2d(cin,cout,k,stride,0)) [+ LeakyReLU(0.2)] on a
    channel-first [C, Nb, H, W] activation.  pad = (left,right,top,bottom)."""
    w = spectral_normalize(params["w"], params["u"])   # f32 [Cout, Cin, k, k]
    cout = w.shape[0]
    if pad is not None:
        l, r, t, b = pad
        x_cf = jnp.pad(x_cf, ((0, 0), (0, 0), (t, b), (l, r)))
    patches, (nb, oh, ow) = _im2col_cf(x_cf, k, k, stride, stride)
    y = conv_matmul(w.reshape(cout, -1), patches, params["b"],
                    apply_act=apply_act, out_dtype=out_dtype)
    return y.reshape(cout, nb, oh, ow)                 # stay channel-first


def sn_conv_final_fused(x_cf, p4, p5, k, stride, pad):
    """d4 (pad + 4x4 s1 conv + LeakyReLU) fused with d5 (1x1 conv, Cout=1)."""
    w4 = spectral_normalize(p4["w"], p4["u"])          # [C4, Cin, 4, 4]
    w5 = spectral_normalize(p5["w"], p5["u"])          # [1, C4, 1, 1]
    c4 = w4.shape[0]
    l, r, t, b = pad
    x_cf = jnp.pad(x_cf, ((0, 0), (0, 0), (t, b), (l, r)))
    patches, (nb, oh, ow) = _im2col_cf(x_cf, k, k, stride, stride)
    logits = fused_final_matmul(w4.reshape(c4, -1), patches, p4["b"],
                                w5.reshape(c4), p5["b"])
    return logits.reshape(1, nb, oh, ow)               # [1, 2B, OH, OW] f32


def nearest_upsample_cf(x, factor):
    """Nearest-neighbour upsample by integer factor on [C, Nb, H, W]."""
    c, nb, h, w = x.shape
    x = jnp.broadcast_to(x[:, :, :, None, :, None], (c, nb, h, factor, w, factor))
    return x.reshape(c, nb, h * factor, w * factor)


# ---------------------------------------------------------------------------
# Parameter init (deterministic, synthetic)
# ---------------------------------------------------------------------------
def init_conv_params(key, cin, cout, k, initstd=0.02):
    kw_, kb, ku = jax.random.split(key, 3)
    w = initstd * jax.random.normal(kw_, (cout, cin, k, k), jnp.float32)
    b = initstd * jax.random.normal(kb, (cout,), jnp.float32)
    u = _l2normalize(jax.random.normal(ku, (cout,), jnp.float32))
    return dict(w=w, b=b, u=u)


def init_hiflc_params(key, Cy, base):
    keys = jax.random.split(key, 6)
    return dict(
        up=init_conv_params(keys[0], Cy, 12, 3),
        d1=init_conv_params(keys[1], 15, base, 4),
        d2=init_conv_params(keys[2], base, base * 2, 4),
        d3=init_conv_params(keys[3], base * 2, base * 4, 4),
        d4=init_conv_params(keys[4], base * 4, base * 8, 4),
        d5=init_conv_params(keys[5], base * 8, 1, 1),
    )


# ---------------------------------------------------------------------------
# Forward pass (mirrors HiFLCdiscriminator.forward)
# ---------------------------------------------------------------------------
def _bce_with_target(p, target_is_one):
    # nn.BCELoss mean reduction; log clamped at -100 like PyTorch.
    if target_is_one:
        lg = jnp.maximum(jnp.log(p), -100.0)
    else:
        lg = jnp.maximum(jnp.log(1.0 - p), -100.0)
    return -jnp.mean(lg)


def hiflc_forward(params, x, x_hat, y_hat):
    # Channel-first bf16 layout [C, Nb, H, W] end-to-end (one transpose at entry).
    y_cf = jnp.transpose(y_hat, (1, 0, 2, 3)).astype(jnp.bfloat16)

    # upnet: CompareGAN_Conv2d(Cy, 12, 3, 1, 1, symmetric)
    latent = sn_conv_cf(y_cf, params["up"], 3, 1, (1, 1, 1, 1), apply_act=True)
    latent = nearest_upsample_cf(latent, 16)           # [12, B, 16h, 16w]

    image = jnp.concatenate([x, x_hat], axis=0)                      # [2B,3,H,W]
    image_cf = jnp.transpose(image, (1, 0, 2, 3)).astype(jnp.bfloat16)
    cond_cf = jnp.concatenate([latent, latent], axis=1)              # [12,2B,H,W]
    disc_cf = jnp.concatenate([image_cf, cond_cf], axis=0)           # [15,2B,H,W]
    # TODO(synk): fold the x16 upsample + batch duplication + channel concat into
    # d1's patch gather / kernel index_map instead of materializing cond_cf/disc_cf.

    h = sn_conv_cf(disc_cf, params["d1"], 4, 2, (1, 1, 1, 1), apply_act=True)
    h = sn_conv_cf(h, params["d2"], 4, 2, (1, 1, 1, 1), apply_act=True)
    h = sn_conv_cf(h, params["d3"], 4, 2, (1, 1, 1, 1), apply_act=True)
    # d4 (asymmetric ZeroPad2d(left=1,right=2,top=1,bottom=2), 4x4 s1, LeakyReLU)
    # fused with d5 (1x1, Cout=1, no activation) in one kernel.
    logits = sn_conv_final_fused(h, params["d4"], params["d5"], 4, 1, (1, 2, 1, 2))

    out_logits = logits.reshape(-1, 1)                 # (nb, oh, ow) order = .view(-1,1)
    out = jax.nn.sigmoid(out_logits)
    half = out.shape[0] // 2
    # Names mirror the PyTorch module (they hold sigmoid probabilities).
    d_real_logits, d_fake_logits = out[:half], out[half:]

    d_loss_real = _bce_with_target(d_real_logits, True)
    d_loss_fake = _bce_with_target(d_fake_logits, False)
    g_loss = _bce_with_target(d_fake_logits, True)
    return (d_loss_real, d_loss_fake, g_loss), d_real_logits, d_fake_logits


# ---------------------------------------------------------------------------
if __name__ == "__main__":
    # Small shapes consistent with the module: Cy=16 latent channels,
    # baseChannel=8, y_hat spatial 2x2 -> images must be 16x larger (32x32).
    Cy, base = 16, 8
    B = 1

    key = jax.random.PRNGKey(0)
    kp, kx, kxh, ky = jax.random.split(key, 4)
    params = init_hiflc_params(kp, Cy, base)

    x = jax.random.uniform(kx, (B, 3, 32, 32), jnp.float32)
    x_hat = jax.random.uniform(kxh, (B, 3, 32, 32), jnp.float32)
    y_hat = jax.random.normal(ky, (B, Cy, 2, 2), jnp.float32)

    fwd = jax.jit(hiflc_forward)
    (d_loss_real, d_loss_fake, g_loss), d_real, d_fake = fwd(params, x, x_hat, y_hat)
    jax.block_until_ready((d_loss_real, d_loss_fake, g_loss, d_real, d_fake))

    assert d_real.shape == (16, 1) and d_fake.shape == (16, 1)
    assert jnp.isfinite(d_loss_real) and jnp.isfinite(d_loss_fake) and jnp.isfinite(g_loss)
    print("KERNEL_OK")
</pallas_src>

<mosaic_0001>
module attributes {stable_mosaic.version = 11 : i64} {
  func.func @_conv_mm_kernel(%arg0: i32, %arg1: memref<12x144xbf16, #tpu.memory_space<vmem>>, %arg2: memref<144x128xbf16, #tpu.memory_space<vmem>>, %arg3: memref<12x1xf32, #tpu.memory_space<vmem>>, %arg4: memref<12x128xbf16, #tpu.memory_space<vmem>>) attributes {dimension_semantics = [#tpu.dimension_semantics<parallel>], iteration_bounds = array<i64: 1>, scalar_prefetch = 0 : i64, scratch_operands = 0 : i64, tpu.core_type = #tpu.core_type<tc>, window_params = [{pipeline_mode = #tpu.pipeline_mode<synchronous>, transform_indices = @transform_0, window_bounds = array<i64: 12, 144>}, {transform_indices = @transform_1, window_bounds = array<i64: 144, 128>}, {pipeline_mode = #tpu.pipeline_mode<synchronous>, transform_indices = @transform_2, window_bounds = array<i64: 12, 1>}, {transform_indices = @transform_3, window_bounds = array<i64: 12, 128>}]} {
    %c0 = arith.constant 0 : index
    %c0_0 = arith.constant 0 : index
    %0 = vector.load %arg1[%c0, %c0_0] : memref<12x144xbf16, #tpu.memory_space<vmem>>, vector<12x144xbf16>
    %c0_1 = arith.constant 0 : index
    %c0_2 = arith.constant 0 : index
    %1 = vector.load %arg2[%c0_1, %c0_2] : memref<144x128xbf16, #tpu.memory_space<vmem>>, vector<144x128xbf16>
    %cst = arith.constant dense<0.000000e+00> : vector<12x128xf32>
    %2 = tpu.matmul %0, %1, %cst {dimension_numbers = #tpu.dot_dimension_numbers<[1], [0], [0], [1], [0, 0, 1, 1], [], []>} : vector<12x144xbf16>, vector<144x128xbf16>, vector<12x128xf32> -> vector<12x128xf32>
    %c0_3 = arith.constant 0 : index
    %c0_4 = arith.constant 0 : index
    %3 = vector.load %arg3[%c0_3, %c0_4] : memref<12x1xf32, #tpu.memory_space<vmem>>, vector<12x1xf32>
    %4 = vector.broadcast %3 : vector<12x1xf32> to vector<12x128xf32>
    %5 = arith.addf %2, %4 : vector<12x128xf32>
    %cst_5 = arith.constant 0.000000e+00 : f32
    %6 = vector.broadcast %cst_5 : f32 to vector<12x128xf32>
    %7 = arith.cmpf oge, %5, %6 : vector<12x128xf32>
    %cst_6 = arith.constant 2.000000e-01 : f32
    %8 = vector.broadcast %cst_6 : f32 to vector<12x128xf32>
    %9 = arith.mulf %8, %5 : vector<12x128xf32>
    %10 = arith.select %7, %5, %9 : vector<12x128xi1>, vector<12x128xf32>
    %11 = arith.truncf %10 : vector<12x128xf32> to vector<12x128xbf16>
    %c0_7 = arith.constant 0 : index
    %c0_8 = arith.constant 0 : index
    %12 = vector.load %arg4[%c0_7, %c0_8] : memref<12x128xbf16, #tpu.memory_space<vmem>>, vector<12x128xbf16>
    tpu.vector_store %arg4[%c0_7, %c0_8], %11 {strides = array<i32>} : memref<12x128xbf16, #tpu.memory_space<vmem>>, vector<12x128xbf16>,
    return
  }
  func.func @transform_0(%arg0: i32) -> (i32, i32) {
    %c0_i32 = arith.constant 0 : i32
    %c0_i32_0 = arith.constant 0 : i32
    %c0_i32_1 = arith.constant 0 : i32
    return %c0_i32, %c0_i32_0 : i32, i32
  }
  func.func @transform_1(%arg0: i32) -> (i32, i32) {
    %c0_i32 = arith.constant 0 : i32
    %c0_i32_0 = arith.constant 0 : i32
    return %c0_i32, %arg0 : i32, i32
  }
  func.func @transform_2(%arg0: i32) -> (i32, i32) {
    %c0_i32 = arith.constant 0 : i32
    %c0_i32_0 = arith.constant 0 : i32
    %c0_i32_1 = arith.constant 0 : i32
    return %c0_i32, %c0_i32_0 : i32, i32
  }
  func.func @transform_3(%arg0: i32) -> (i32, i32) {
    %c0_i32 = arith.constant 0 : i32
    %c0_i32_0 = arith.constant 0 : i32
    return %c0_i32, %arg0 : i32, i32
  }
}

module attributes {stable_mosaic.version = 11 : i64} {
  func.func @_conv_mm_kernel(%arg0: i32, %arg1: memref<8x240xbf16, #tpu.memory_space<vmem>>, %arg2: memref<240x512xbf16, #tpu.memory_space<vmem>>, %arg3: memref<8x1xf32, #tpu.memory_space<vmem>>, %arg4: memref<8x512xbf16, #tpu.memory_space<vmem>>) attributes {dimension_semantics = [#tpu.dimension_semantics<parallel>], iteration_bounds = array<i64: 1>, scalar_prefetch = 0 : i64, scratch_operands = 0 : i64, tpu.core_type = #tpu.core_type<tc>, window_params = [{pipeline_mode = #tpu.pipeline_mode<synchronous>, transform_indices = @transform_0, window_bounds = array<i64: 8, 240>}, {transform_indices = @transform_1, window_bounds = array<i64: 240, 512>}, {pipeline_mode = #tpu.pipeline_mode<synchronous>, transform_indices = @transform_2, window_bounds = array<i64: 8, 1>}, {transform_indices = @transform_3, window_bounds = array<i64: 8, 512>}]} {
    %c0 = arith.constant 0 : index
    %c0_0 = arith.constant 0 : index
    %0 = vector.load %arg1[%c0, %c0_0] : memref<8x240xbf16, #tpu.memory_space<vmem>>, vector<8x240xbf16>
    %c0_1 = arith.constant 0 : index
    %c0_2 = arith.constant 0 : index
    %1 = vector.load %arg2[%c0_1, %c0_2] : memref<240x512xbf16, #tpu.memory_space<vmem>>, vector<240x512xbf16>
    %cst = arith.constant dense<0.000000e+00> : vector<8x512xf32>
    %2 = tpu.matmul %0, %1, %cst {dimension_numbers = #tpu.dot_dimension_numbers<[1], [0], [0], [1], [0, 0, 1, 1], [], []>} : vector<8x240xbf16>, vector<240x512xbf16>, vector<8x512xf32> -> vector<8x512xf32>
    %c0_3 = arith.constant 0 : index
    %c0_4 = arith.constant 0 : index
    %3 = vector.load %arg3[%c0_3, %c0_4] : memref<8x1xf32, #tpu.memory_space<vmem>>, vector<8x1xf32>
    %4 = vector.broadcast %3 : vector<8x1xf32> to vector<8x512xf32>
    %5 = arith.addf %2, %4 : vector<8x512xf32>
    %cst_5 = arith.constant 0.000000e+00 : f32
    %6 = vector.broadcast %cst_5 : f32 to vector<8x512xf32>
    %7 = arith.cmpf oge, %5, %6 : vector<8x512xf32>
    %cst_6 = arith.constant 2.000000e-01 : f32
    %8 = vector.broadcast %cst_6 : f32 to vector<8x512xf32>
    %9 = arith.mulf %8, %5 : vector<8x512xf32>
    %10 = arith.select %7, %5, %9 : vector<8x512xi1>, vector<8x512xf32>
    %11 = arith.truncf %10 : vector<8x512xf32> to vector<8x512xbf16>
    %c0_7 = arith.constant 0 : index
    %c0_8 = arith.constant 0 : index
    %12 = vector.load %arg4[%c0_7, %c0_8] : memref<8x512xbf16, #tpu.memory_space<vmem>>, vector<8x512xbf16>
    tpu.vector_store %arg4[%c0_7, %c0_8], %11 {strides = array<i32>} : memref<8x512xbf16, #tpu.memory_space<vmem>>, vector<8x512xbf16>,
    return
  }
  func.func @transform_0(%arg0: i32) -> (i32, i32) {
    %c0_i32 = arith.constant 0 : i32
    %c0_i32_0 = arith.constant 0 : i32
    %c0_i32_1 = arith.constant 0 : i32
    return %c0_i32, %c0_i32_0 : i32, i32
  }
  func.func @transform_1(%arg0: i32) -> (i32, i32) {
    %c0_i32 = arith.constant 0 : i32
    %c0_i32_0 = arith.constant 0 : i32
    return %c0_i32, %arg0 : i32, i32
  }
  func.func @transform_2(%arg0: i32) -> (i32, i32) {
    %c0_i32 = arith.constant 0 : i32
    %c0_i32_0 = arith.constant 0 : i32
    %c0_i32_1 = arith.constant 0 : i32
    return %c0_i32, %c0_i32_0 : i32, i32
  }
  func.func @transform_3(%arg0: i32) -> (i32, i32) {
    %c0_i32 = arith.constant 0 : i32
    %c0_i32_0 = arith.constant 0 : i32
    return %c0_i32, %arg0 : i32, i32
  }
}

module attributes {stable_mosaic.version = 11 : i64} {
  func.func @_conv_mm_kernel(%arg0: i32, %arg1: memref<16x128xbf16, #tpu.memory_space<vmem>>, %arg2: memref<128x128xbf16, #tpu.memory_space<vmem>>, %arg3: memref<16x1xf32, #tpu.memory_space<vmem>>, %arg4: memref<16x128xbf16, #tpu.memory_space<vmem>>) attributes {dimension_semantics = [#tpu.dimension_semantics<parallel>], iteration_bounds = array<i64: 1>, scalar_prefetch = 0 : i64, scratch_operands = 0 : i64, tpu.core_type = #tpu.core_type<tc>, window_params = [{pipeline_mode = #tpu.pipeline_mode<synchronous>, transform_indices = @transform_0, window_bounds = array<i64: 16, 128>}, {transform_indices = @transform_1, window_bounds = array<i64: 128, 128>}, {pipeline_mode = #tpu.pipeline_mode<synchronous>, transform_indices = @transform_2, window_bounds = array<i64: 16, 1>}, {transform_indices = @transform_3, window_bounds = array<i64: 16, 128>}]} {
    %c0 = arith.constant 0 : index
    %c0_0 = arith.constant 0 : index
    %0 = vector.load %arg1[%c0, %c0_0] : memref<16x128xbf16, #tpu.memory_space<vmem>>, vector<16x128xbf16>
    %c0_1 = arith.constant 0 : index
    %c0_2 = arith.constant 0 : index
    %1 = vector.load %arg2[%c0_1, %c0_2] : memref<128x128xbf16, #tpu.memory_space<vmem>>, vector<128x128xbf16>
    %cst = arith.constant dense<0.000000e+00> : vector<16x128xf32>
    %2 = tpu.matmul %0, %1, %cst {dimension_numbers = #tpu.dot_dimension_numbers<[1], [0], [0], [1], [0, 0, 1, 1], [], []>} : vector<16x128xbf16>, vector<128x128xbf16>, vector<16x128xf32> -> vector<16x128xf32>
    %c0_3 = arith.constant 0 : index
    %c0_4 = arith.constant 0 : index
    %3 = vector.load %arg3[%c0_3, %c0_4] : memref<16x1xf32, #tpu.memory_space<vmem>>, vector<16x1xf32>
    %4 = vector.broadcast %3 : vector<16x1xf32> to vector<16x128xf32>
    %5 = arith.addf %2, %4 : vector<16x128xf32>
    %cst_5 = arith.constant 0.000000e+00 : f32
    %6 = vector.broadcast %cst_5 : f32 to vector<16x128xf32>
    %7 = arith.cmpf oge, %5, %6 : vector<16x128xf32>
    %cst_6 = arith.constant 2.000000e-01 : f32
    %8 = vector.broadcast %cst_6 : f32 to vector<16x128xf32>
    %9 = arith.mulf %8, %5 : vector<16x128xf32>
    %10 = arith.select %7, %5, %9 : vector<16x128xi1>, vector<16x128xf32>
    %11 = arith.truncf %10 : vector<16x128xf32> to vector<16x128xbf16>
    %c0_7 = arith.constant 0 : index
    %c0_8 = arith.constant 0 : index
    %12 = vector.load %arg4[%c0_7, %c0_8] : memref<16x128xbf16, #tpu.memory_space<vmem>>, vector<16x128xbf16>
    tpu.vector_store %arg4[%c0_7, %c0_8], %11 {strides = array<i32>} : memref<16x128xbf16, #tpu.memory_space<vmem>>, vector<16x128xbf16>,
    return
  }
  func.func @transform_0(%arg0: i32) -> (i32, i32) {
    %c0_i32 = arith.constant 0 : i32
    %c0_i32_0 = arith.constant 0 : i32
    %c0_i32_1 = arith.constant 0 : i32
    return %c0_i32, %c0_i32_0 : i32, i32
  }
  func.func @transform_1(%arg0: i32) -> (i32, i32) {
    %c0_i32 = arith.constant 0 : i32
    %c0_i32_0 = arith.constant 0 : i32
    return %c0_i32, %arg0 : i32, i32
  }
  func.func @transform_2(%arg0: i32) -> (i32, i32) {
    %c0_i32 = arith.constant 0 : i32
    %c0_i32_0 = arith.constant 0 : i32
    %c0_i32_1 = arith.constant 0 : i32
    return %c0_i32, %c0_i32_0 : i32, i32
  }
  func.func @transform_3(%arg0: i32) -> (i32, i32) {
    %c0_i32 = arith.constant 0 : i32
    %c0_i32_0 = arith.constant 0 : i32
    return %c0_i32, %arg0 : i32, i32
  }
}

module attributes {stable_mosaic.version = 11 : i64} {
  func.func @_conv_mm_kernel(%arg0: i32, %arg1: memref<32x256xbf16, #tpu.memory_space<vmem>>, %arg2: memref<256x128xbf16, #tpu.memory_space<vmem>>, %arg3: memref<32x1xf32, #tpu.memory_space<vmem>>, %arg4: memref<32x128xbf16, #tpu.memory_space<vmem>>) attributes {dimension_semantics = [#tpu.dimension_semantics<parallel>], iteration_bounds = array<i64: 1>, scalar_prefetch = 0 : i64, scratch_operands = 0 : i64, tpu.core_type = #tpu.core_type<tc>, window_params = [{pipeline_mode = #tpu.pipeline_mode<synchronous>, transform_indices = @transform_0, window_bounds = array<i64: 32, 256>}, {transform_indices = @transform_1, window_bounds = array<i64: 256, 128>}, {pipeline_mode = #tpu.pipeline_mode<synchronous>, transform_indices = @transform_2, window_bounds = array<i64: 32, 1>}, {transform_indices = @transform_3, window_bounds = array<i64: 32, 128>}]} {
    %c0 = arith.constant 0 : index
    %c0_0 = arith.constant 0 : index
    %0 = vector.load %arg1[%c0, %c0_0] : memref<32x256xbf16, #tpu.memory_space<vmem>>, vector<32x256xbf16>
    %c0_1 = arith.constant 0 : index
    %c0_2 = arith.constant 0 : index
    %1 = vector.load %arg2[%c0_1, %c0_2] : memref<256x128xbf16, #tpu.memory_space<vmem>>, vector<256x128xbf16>
    %cst = arith.constant dense<0.000000e+00> : vector<32x128xf32>
    %2 = tpu.matmul %0, %1, %cst {dimension_numbers = #tpu.dot_dimension_numbers<[1], [0], [0], [1], [0, 0, 1, 1], [], []>} : vector<32x256xbf16>, vector<256x128xbf16>, vector<32x128xf32> -> vector<32x128xf32>
    %c0_3 = arith.constant 0 : index
    %c0_4 = arith.constant 0 : index
    %3 = vector.load %arg3[%c0_3, %c0_4] : memref<32x1xf32, #tpu.memory_space<vmem>>, vector<32x1xf32>
    %4 = vector.broadcast %3 : vector<32x1xf32> to vector<32x128xf32>
    %5 = arith.addf %2, %4 : vector<32x128xf32>
    %cst_5 = arith.constant 0.000000e+00 : f32
    %6 = vector.broadcast %cst_5 : f32 to vector<32x128xf32>
    %7 = arith.cmpf oge, %5, %6 : vector<32x128xf32>
    %cst_6 = arith.constant 2.000000e-01 : f32
    %8 = vector.broadcast %cst_6 : f32 to vector<32x128xf32>
    %9 = arith.mulf %8, %5 : vector<32x128xf32>
    %10 = arith.select %7, %5, %9 : vector<32x128xi1>, vector<32x128xf32>
    %11 = arith.truncf %10 : vector<32x128xf32> to vector<32x128xbf16>
    %c0_7 = arith.constant 0 : index
    %c0_8 = arith.constant 0 : index
    %12 = vector.load %arg4[%c0_7, %c0_8] : memref<32x128xbf16, #tpu.memory_space<vmem>>, vector<32x128xbf16>
    tpu.vector_store %arg4[%c0_7, %c0_8], %11 {strides = array<i32>} : memref<32x128xbf16, #tpu.memory_space<vmem>>, vector<32x128xbf16>,
    return
  }
  func.func @transform_0(%arg0: i32) -> (i32, i32) {
    %c0_i32 = arith.constant 0 : i32
    %c0_i32_0 = arith.constant 0 : i32
    %c0_i32_1 = arith.constant 0 : i32
    return %c0_i32, %c0_i32_0 : i32, i32
  }
  func.func @transform_1(%arg0: i32) -> (i32, i32) {
    %c0_i32 = arith.constant 0 : i32
    %c0_i32_0 = arith.constant 0 : i32
    return %c0_i32, %arg0 : i32, i32
  }
  func.func @transform_2(%arg0: i32) -> (i32, i32) {
    %c0_i32 = arith.constant 0 : i32
    %c0_i32_0 = arith.constant 0 : i32
    %c0_i32_1 = arith.constant 0 : i32
    return %c0_i32, %c0_i32_0 : i32, i32
  }
  func.func @transform_3(%arg0: i32) -> (i32, i32) {
    %c0_i32 = arith.constant 0 : i32
    %c0_i32_0 = arith.constant 0 : i32
    return %c0_i32, %arg0 : i32, i32
  }
}

module attributes {stable_mosaic.version = 11 : i64} {
  func.func @_fused_final_kernel(%arg0: i32, %arg1: memref<64x512xbf16, #tpu.memory_space<vmem>>, %arg2: memref<512x128xbf16, #tpu.memory_space<vmem>>, %arg3: memref<64x1xf32, #tpu.memory_space<vmem>>, %arg4: memref<64x1xf32, #tpu.memory_space<vmem>>, %arg5: memref<1x1xf32, #tpu.memory_space<vmem>>, %arg6: memref<1x128xf32, #tpu.memory_space<vmem>>) attributes {dimension_semantics = [#tpu.dimension_semantics<parallel>], iteration_bounds = array<i64: 1>, scalar_prefetch = 0 : i64, scratch_operands = 0 : i64, tpu.core_type = #tpu.core_type<tc>, window_params = [{pipeline_mode = #tpu.pipeline_mode<synchronous>, transform_indices = @transform_0, window_bounds = array<i64: 64, 512>}, {transform_indices = @transform_1, window_bounds = array<i64: 512, 128>}, {pipeline_mode = #tpu.pipeline_mode<synchronous>, transform_indices = @transform_2, window_bounds = array<i64: 64, 1>}, {pipeline_mode = #tpu.pipeline_mode<synchronous>, transform_indices = @transform_3, window_bounds = array<i64: 64, 1>}, {pipeline_mode = #tpu.pipeline_mode<synchronous>, transform_indices = @transform_4, window_bounds = array<i64: 1, 1>}, {transform_indices = @transform_5, window_bounds = array<i64: 1, 128>}]} {
    %c0 = arith.constant 0 : index
    %c0_0 = arith.constant 0 : index
    %0 = vector.load %arg1[%c0, %c0_0] : memref<64x512xbf16, #tpu.memory_space<vmem>>, vector<64x512xbf16>
    %c0_1 = arith.constant 0 : index
    %c0_2 = arith.constant 0 : index
    %1 = vector.load %arg2[%c0_1, %c0_2] : memref<512x128xbf16, #tpu.memory_space<vmem>>, vector<512x128xbf16>
    %cst = arith.constant dense<0.000000e+00> : vector<64x128xf32>
    %2 = tpu.matmul %0, %1, %cst {dimension_numbers = #tpu.dot_dimension_numbers<[1], [0], [0], [1], [0, 0, 1, 1], [], []>} : vector<64x512xbf16>, vector<512x128xbf16>, vector<64x128xf32> -> vector<64x128xf32>
    %c0_3 = arith.constant 0 : index
    %c0_4 = arith.constant 0 : index
    %3 = vector.load %arg3[%c0_3, %c0_4] : memref<64x1xf32, #tpu.memory_space<vmem>>, vector<64x1xf32>
    %4 = vector.broadcast %3 : vector<64x1xf32> to vector<64x128xf32>
    %5 = arith.addf %2, %4 : vector<64x128xf32>
    %cst_5 = arith.constant 0.000000e+00 : f32
    %6 = vector.broadcast %cst_5 : f32 to vector<64x128xf32>
    %7 = arith.cmpf oge, %5, %6 : vector<64x128xf32>
    %cst_6 = arith.constant 2.000000e-01 : f32
    %8 = vector.broadcast %cst_6 : f32 to vector<64x128xf32>
    %9 = arith.mulf %8, %5 : vector<64x128xf32>
    %10 = arith.select %7, %5, %9 : vector<64x128xi1>, vector<64x128xf32>
    %c0_7 = arith.constant 0 : index
    %c0_8 = arith.constant 0 : index
    %11 = vector.load %arg4[%c0_7, %c0_8] : memref<64x1xf32, #tpu.memory_space<vmem>>, vector<64x1xf32>
    %12 = vector.broadcast %11 : vector<64x1xf32> to vector<64x128xf32>
    %13 = arith.mulf %12, %10 : vector<64x128xf32>
    %cst_9 = arith.constant dense<0.000000e+00> : vector<128xf32>
    %14 = vector.multi_reduction <add>, %13, %cst_9 [0] : vector<64x128xf32> to vector<128xf32>
    %15 = vector.shape_cast %14 : vector<128xf32> to vector<1x128xf32>
    %c0_10 = arith.constant 0 : index
    %c0_11 = arith.constant 0 : index
    %16 = vector.load %arg5[%c0_10, %c0_11] : memref<1x1xf32, #tpu.memory_space<vmem>>, vector<1x1xf32>
    %17 = vector.broadcast %16 : vector<1x1xf32> to vector<1x128xf32>
    %18 = arith.addf %15, %17 : vector<1x128xf32>
    %c0_12 = arith.constant 0 : index
    %c0_13 = arith.constant 0 : index
    %19 = vector.load %arg6[%c0_12, %c0_13] : memref<1x128xf32, #tpu.memory_space<vmem>>, vector<1x128xf32>
    tpu.vector_store %arg6[%c0_12, %c0_13], %18 {strides = array<i32>} : memref<1x128xf32, #tpu.memory_space<vmem>>, vector<1x128xf32>,
    return
  }
  func.func @transform_0(%arg0: i32) -> (i32, i32) {
    %c0_i32 = arith.constant 0 : i32
    %c0_i32_0 = arith.constant 0 : i32
    %c0_i32_1 = arith.constant 0 : i32
    return %c0_i32, %c0_i32_0 : i32, i32
  }
  func.func @transform_1(%arg0: i32) -> (i32, i32) {
    %c0_i32 = arith.constant 0 : i32
    %c0_i32_0 = arith.constant 0 : i32
    return %c0_i32, %arg0 : i32, i32
  }
  func.func @transform_2(%arg0: i32) -> (i32, i32) {
    %c0_i32 = arith.constant 0 : i32
    %c0_i32_0 = arith.constant 0 : i32
    %c0_i32_1 = arith.constant 0 : i32
    return %c0_i32, %c0_i32_0 : i32, i32
  }
  func.func @transform_3(%arg0: i32) -> (i32, i32) {
    %c0_i32 = arith.constant 0 : i32
    %c0_i32_0 = arith.constant 0 : i32
    %c0_i32_1 = arith.constant 0 : i32
    return %c0_i32, %c0_i32_0 : i32, i32
  }
  func.func @transform_4(%arg0: i32) -> (i32, i32) {
    %c0_i32 = arith.constant 0 : i32
    %c0_i32_0 = arith.constant 0 : i32
    %c0_i32_1 = arith.constant 0 : i32
    return %c0_i32, %c0_i32_0 : i32, i32
  }
  func.func @transform_5(%arg0: i32) -> (i32, i32) {
    %c0_i32 = arith.constant 0 : i32
    %c0_i32_0 = arith.constant 0 : i32
    return %c0_i32, %arg0 : i32, i32
  }
}

</mosaic_0001>

<bundles_post_ra>
// kernel: hiflc_forward.5
= control target key start
LH: loop header
LB: loop body
LE: loop exit
PB: predicated region body
PF: predicated region fallthrough
CT: control target
= control target key end

     0   :  { %v205_v0 = vmov 0   ;;  %vm110_vm0 = vcmask 130048   ;;  %s271_s1 = inlined_call_operand.vmem [shape: bf16[144,128], index: 1, kind: input, shape index: {}]   ;;  %s272_s0 = inlined_call_operand.vmem [shape: bf16[12,144], index: 0, kind: input, shape index: {}]   ;;  %s273_s2 = inlined_call_operand.vmem [shape: f32[12,1], index: 2, kind: input, shape index: {}]   ;;  %s274_s3 = inlined_call_operand.vmem [shape: bf16[12,128], index: 3, kind: output, shape index: {}]  }
   0x1   :  { %114 = vmatprep.subr.bf16.mxu0 %v205_v0  ;;  %v193_v1 = vld [vmem:[%s271_s1] sm:$0xff]   ;;  %192 = vset.pattern.permute.xlu0 %v205_v0  ;;  %v194_v2 = vld [vmem:[%s271_s1 + $0x8] sm:$0xff]   ;;  %v195_v3 = vld [vmem:[%s271_s1 + $0x10] sm:$0xff]  }
   0x2   :  { %115 = vmatpush1.bf16.msra.mxu0 %v193_v1  ;;  %v196_v4 = vld [vmem:[%s271_s1 + $0x18] sm:$0xff]   ;;  %v204_v5 = vld [vmem:[%s272_s0 + $0x4] ss:$8 sps:$4 sm:$0x3f]   ;;  %v36_v7 = vld [vmem:[%s273_s2 + $0x8] sm:$0xf] }
   0x3   :  { %116 = vmatprep.subr.bf16.mxu0 %v205_v0  ;;  %v35_v6 = vld [vmem:[%s273_s2] sm:$0xff]  ;;  %186 = vmatprep.mubr.msk.bf16.mxu0 %vm110_vm0, %v204_v5  ;;  %v198_v9 = vld [vmem:[%s271_s1 + $0x28] sm:$0xff]   ;;  %v199_v10 = vld [vmem:[%s271_s1 + $0x30] sm:$0xff]  }
   0x4   :  { %39 = vperm.xlu0 %192, %v35_v6   ;;  %v197_v8 = vld [vmem:[%s271_s1 + $0x20] sm:$0xff]   ;;  %v200_v11 = vld [vmem:[%s271_s1 + $0x38] sm:$0xff]  }
   0x5   :  { %v201_v12 = vld [vmem:[%s271_s1 + $0x40] sm:$0xff]  }
   0x6   :  { %117 = vmatpush1.bf16.msra.mxu0 %v194_v2  ;;  %v202_v13 = vld [vmem:[%s272_s0] ss:$8 sps:$4 sm:$0x3f]  }
   0x7   :  { %118 = vmatprep.subr.bf16.mxu0 %v205_v0 }
   0x8   :  { %44 = vperm.xlu0 %192, %v36_v7  }
   0xa   :  { %119 = vmatpush1.bf16.msra.mxu0 %v195_v3 }
   0xb   :  { %120 = vmatprep.subr.bf16.mxu0 %v205_v0 }
   0xe   :  { %121 = vmatpush1.bf16.msra.mxu0 %v196_v4 }
   0xf   :  { %122 = vmatprep.subr.bf16.mxu0 %v205_v0 }
  0x12   :  { %123 = vmatpush1.bf16.msra.mxu0 %v197_v8 }
  0x13   :  { %124 = vmatprep.subr.bf16.mxu0 %v205_v0 }
  0x16   :  { %125 = vmatpush1.bf16.msra.mxu0 %v198_v9 }
  0x17   :  { %126 = vmatprep.subr.bf16.mxu0 %v205_v0 }
  0x1a   :  { %127 = vmatpush1.bf16.msra.mxu0 %v199_v10 }
  0x1b   :  { %128 = vmatprep.subr.bf16.mxu0 %v205_v0 }
  0x1e   :  { %129 = vmatpush1.bf16.msra.mxu0 %v200_v11 }
  0x1f   :  { %130 = vmatprep.subr.bf16.mxu0 %v205_v0 }
  0x22   :  { %131 = vmatpush1.bf16.msra.mxu0 %v201_v12 }
  0x25   :  { %147 = vmatmul.mubr.bf16.vlgmr.msra.gmra.mrb[0].mxu0 %v202_v13 }
  0x83   :  { %v40_v14 = vpop.permute.xlu0 %39 }
  0x87   :  { %v45_v18 = vpop.permute.xlu0 %44 }
  0xf8   :  { %v148_v15 = vpop.f32.mrb[0].mxu0 }
  0xf9   :  { %v149_v16 = vadd.f32 %v148_v15, %v40_v14  ;;  %v150_v17 = vpop.f32.mrb[1].mxu0 }
  0xfa   :  { %v151_v19 = vpop.f32.mrb[2].mxu0 }
  0xfb   :  { %vm155_vm1 = vcmp.ge.f32.partialorder %v149_v16, 0.0  ;;  %v157_v20 = vmul.f32 0.2, %v149_v16  ;;  %v152_v21 = vadd.f32 %v151_v19, %v45_v18  ;;  %v153_v22 = vpop.f32.mrb[3].mxu0 }
  0xfd   :  { %v159_v23 = vsel %vm155_vm1, %v149_v16, %v157_v20  ;;  %vm156_vm2 = vcmp.ge.f32.partialorder %v152_v21, 0.0  ;;  %v158_v24 = vmul.f32 0.2, %v152_v21 }
  0xfe   :  { %v189_v25 = vpack.c.bf16 %v159_v23, %v159_v23 }
  0xff   :  { %v160_v26 = vsel %vm156_vm2, %v152_v21, %v158_v24 }
 0x100   :  { %169 = vst [vmem:[%s274_s3] sm:$0xf] %v189_v25  ;;  %v190_v27 = vpack.c.bf16 %v160_v26, %v160_v26 }
 0x102   :  { %170 = vst [vmem:[%s274_s3 + $0x4] sm:$0x3] %v190_v27 }

// kernel: hiflc_forward.6
= control target key start
LH: loop header
LB: loop body
LE: loop exit
PB: predicated region body
PF: predicated region fallthrough
CT: control target
= control target key end

     0   :  { %v670_v1 = vmov 0   ;;  %vm388_vm0 = vcmask 916480   ;;  %s883_s1 = inlined_call_operand.vmem [shape: bf16[240,512], index: 1, kind: input, shape index: {}]   ;;  %s884_s0 = inlined_call_operand.vmem [shape: bf16[8,240], index: 0, kind: input, shape index: {}]   ;;  %s885_s2 = inlined_call_operand.vmem [shape: f32[8,1], index: 2, kind: input, shape index: {}]   ;;  %s886_s3 = inlined_call_operand.vmem [shape: bf16[8,512], index: 3, kind: output, shape index: {}]  }
   0x1   :  { %v578_v0 = vld [vmem:[%s883_s1 + $0x4] ss:$16 sps:$4 sm:$0xff]   ;;  %577 = vset.pattern.permute.xlu0 %v670_v1  ;;  %v580_v2 = vld [vmem:[%s883_s1 + $0xc] ss:$16 sps:$4 sm:$0xff]   ;;  %v582_v3 = vld [vmem:[%s883_s1] ss:$16 sps:$4 sm:$0xff]  }
   0x2   :  { %392 = vmatprep.subr.bf16.mxu0 %v578_v0  ;;  %v583_v4 = vld [vmem:[%s883_s1 + $0x8] ss:$16 sps:$4 sm:$0xff]   ;;  %433 = vmatprep.subr.bf16.mxu1 %v580_v2  ;;  %v584_v5 = vld [vmem:[%s883_s1 + $0x24] ss:$16 sps:$4 sm:$0xff]   ;;  %v586_v6 = vld [vmem:[%s883_s1 + $0x2c] ss:$16 sps:$4 sm:$0xff]  }
   0x3   :  { %393 = vmatpush1.bf16.msra.mxu0 %v582_v3  ;;  %434 = vmatpush1.bf16.msra.mxu1 %v583_v4  ;;  %v588_v7 = vld [vmem:[%s883_s1 + $0x20] ss:$16 sps:$4 sm:$0xff]   ;;  %v589_v8 = vld [vmem:[%s883_s1 + $0x28] ss:$16 sps:$4 sm:$0xff]   ;;  %v590_v9 = vld [vmem:[%s883_s1 + $0x44] ss:$16 sps:$4 sm:$0xff]  }
   0x4   :  { %394 = vmatprep.subr.bf16.mxu0 %v584_v5  ;;  %435 = vmatprep.subr.bf16.mxu1 %v586_v6  ;;  %v592_v10 = vld [vmem:[%s883_s1 + $0x4c] ss:$16 sps:$4 sm:$0xff]   ;;  %v594_v11 = vld [vmem:[%s883_s1 + $0x40] ss:$16 sps:$4 sm:$0xff]   ;;  %v595_v12 = vld [vmem:[%s883_s1 + $0x48] ss:$16 sps:$4 sm:$0xff]  }
   0x5   :  { %v596_v13 = vld [vmem:[%s883_s1 + $0x64] ss:$16 sps:$4 sm:$0xff]   ;;  %v598_v14 = vld [vmem:[%s883_s1 + $0x6c] ss:$16 sps:$4 sm:$0xff]   ;;  %v600_v15 = vld [vmem:[%s883_s1 + $0x60] ss:$16 sps:$4 sm:$0xff]  }
   0x6   :  { %v601_v16 = vld [vmem:[%s883_s1 + $0x68] ss:$16 sps:$4 sm:$0xff]   ;;  %v602_v17 = vld [vmem:[%s883_s1 + $0x84] ss:$16 sps:$4 sm:$0xff]   ;;  %v604_v18 = vld [vmem:[%s883_s1 + $0x8c] ss:$16 sps:$4 sm:$0xff]  }
   0x7   :  { %395 = vmatpush1.bf16.msra.mxu0 %v588_v7  ;;  %436 = vmatpush1.bf16.msra.mxu1 %v589_v8  ;;  %v606_v19 = vld [vmem:[%s883_s1 + $0x80] ss:$16 sps:$4 sm:$0xff]   ;;  %v607_v20 = vld [vmem:[%s883_s1 + $0x88] ss:$16 sps:$4 sm:$0xff]   ;;  %v608_v21 = vld [vmem:[%s883_s1 + $0xa4] ss:$16 sps:$4 sm:$0xff]  }
   0x8   :  { %396 = vmatprep.subr.bf16.mxu0 %v590_v9  ;;  %437 = vmatprep.subr.bf16.mxu1 %v592_v10  ;;  %v610_v22 = vld [vmem:[%s883_s1 + $0xac] ss:$16 sps:$4 sm:$0xff]   ;;  %v612_v23 = vld [vmem:[%s883_s1 + $0xa0] ss:$16 sps:$4 sm:$0xff]   ;;  %v613_v24 = vld [vmem:[%s883_s1 + $0xa8] ss:$16 sps:$4 sm:$0xff]  }
   0x9   :  { %v614_v25 = vld [vmem:[%s883_s1 + $0xc4] ss:$16 sps:$4 sm:$0xff]   ;;  %v616_v26 = vld [vmem:[%s883_s1 + $0xcc] ss:$16 sps:$4 sm:$0xff]   ;;  %v618_v27 = vld [vmem:[%s883_s1 + $0xc0] ss:$16 sps:$4 sm:$0xff]  }
   0xa   :  { %v619_v28 = vld [vmem:[%s883_s1 + $0xc8] ss:$16 sps:$4 sm:$0xff]   ;;  %v620_v29 = vld [vmem:[%s883_s1 + $0xe4] ss:$16 sps:$4 sm:$0xff]   ;;  %v622_v30 = vld [vmem:[%s883_s1 + $0xec] ss:$16 sps:$4 sm:$0xff]  }
   0xb   :  { %397 = vmatpush1.bf16.msra.mxu0 %v594_v11  ;;  %438 = vmatpush1.bf16.msra.mxu1 %v595_v12  ;;  %v624_v31 = vld [vmem:[%s883_s1 + $0xe0] ss:$16 sps:$4 sm:$0xff]   ;;  %v625_v32 = vld [vmem:[%s883_s1 + $0xe8] ss:$16 sps:$4 sm:$0xff]   ;;  %v626_v33 = vld [vmem:[%s883_s1 + $0x104] ss:$16 sps:$4 sm:$0xff]  }
   0xc   :  { %398 = vmatprep.subr.bf16.mxu0 %v596_v13  ;;  %439 = vmatprep.subr.bf16.mxu1 %v598_v14  ;;  %v628_v34 = vld [vmem:[%s883_s1 + $0x10c] ss:$16 sps:$4 sm:$0xff]   ;;  %v630_v35 = vld [vmem:[%s883_s1 + $0x100] ss:$16 sps:$4 sm:$0xff]   ;;  %v631_v36 = vld [vmem:[%s883_s1 + $0x108] ss:$16 sps:$4 sm:$0xff]  }
   0xd   :  { %v632_v37 = vld [vmem:[%s883_s1 + $0x124] ss:$16 sps:$4 sm:$0xff]   ;;  %v634_v38 = vld [vmem:[%s883_s1 + $0x12c] ss:$16 sps:$4 sm:$0xff]   ;;  %v636_v39 = vld [vmem:[%s883_s1 + $0x120] ss:$16 sps:$4 sm:$0xff]  }
   0xe   :  { %v637_v40 = vld [vmem:[%s883_s1 + $0x128] ss:$16 sps:$4 sm:$0xff]   ;;  %v638_v41 = vld [vmem:[%s883_s1 + $0x144] ss:$16 sps:$4 sm:$0xff]   ;;  %v640_v42 = vld [vmem:[%s883_s1 + $0x14c] ss:$16 sps:$4 sm:$0xff]  }
   0xf   :  { %399 = vmatpush1.bf16.msra.mxu0 %v600_v15  ;;  %440 = vmatpush1.bf16.msra.mxu1 %v601_v16  ;;  %v642_v43 = vld [vmem:[%s883_s1 + $0x140] ss:$16 sps:$4 sm:$0xff]   ;;  %v643_v44 = vld [vmem:[%s883_s1 + $0x148] ss:$16 sps:$4 sm:$0xff]   ;;  %v644_v47 = vld [vmem:[%s883_s1 + $0x164] ss:$16 sps:$4 sm:$0xff]  }
  0x10   :  { %400 = vmatprep.subr.bf16.mxu0 %v602_v17  ;;  %441 = vmatprep.subr.bf16.mxu1 %v604_v18  ;;  %v15_v45 = vld [vmem:[%s884_s0] sm:$0xff]  ;;  %v646_v48 = vld [vmem:[%s883_s1 + $0x16c] ss:$16 sps:$4 sm:$0xff]   ;;  %v649_v51 = vld [vmem:[%s883_s1 + $0x168] ss:$16 sps:$4 sm:$0xff]  }
  0x11   :  { %v76_v46 = vld [vmem:[%s885_s2] sm:$0xff]  ;;  %v509_v49 = vcombine.high %v15_v45, %v15_v45  ;;  %v652_v53 = vld [vmem:[%s883_s1 + $0x18c] ss:$16 sps:$4 sm:$0xff]   ;;  %v655_v55 = vld [vmem:[%s883_s1 + $0x188] ss:$16 sps:$4 sm:$0xff]   ;;  %v508_v0 = vcombine.low %v15_v45, %v15_v45 }
  0x12   :  { %79 = vperm.xlu0 %577, %v76_v46   ;;  %v648_v50 = vld [vmem:[%s883_s1 + $0x160] ss:$16 sps:$4 sm:$0xff]   ;;  %v650_v52 = vld [vmem:[%s883_s1 + $0x184] ss:$16 sps:$4 sm:$0xff]   ;;  %v658_v57 = vld [vmem:[%s883_s1 + $0x1ac] ss:$16 sps:$4 sm:$0xff]  }
  0x13   :  { %401 = vmatpush1.bf16.msra.mxu0 %v606_v19  ;;  %442 = vmatpush1.bf16.msra.mxu1 %v607_v20  ;;  %v654_v54 = vld [vmem:[%s883_s1 + $0x180] ss:$16 sps:$4 sm:$0xff]   ;;  %v656_v56 = vld [vmem:[%s883_s1 + $0x1a4] ss:$16 sps:$4 sm:$0xff]   ;;  %v661_v59 = vld [vmem:[%s883_s1 + $0x1a8] ss:$16 sps:$4 sm:$0xff]  }
  0x14   :  { %402 = vmatprep.subr.bf16.mxu0 %v608_v21  ;;  %443 = vmatprep.subr.bf16.mxu1 %v610_v22  ;;  %v660_v58 = vld [vmem:[%s883_s1 + $0x1a0] ss:$16 sps:$4 sm:$0xff]   ;;  %v662_v60 = vld [vmem:[%s883_s1 + $0x1c4] ss:$16 sps:$4 sm:$0xff]   ;;  %v664_v61 = vld [vmem:[%s883_s1 + $0x1cc] ss:$16 sps:$4 sm:$0xff]  }
  0x15   :  { %570 = vmatprep.mubr.msk.bf16.mxu0 %vm388_vm0, %v509_v49  ;;  %571 = vmatprep.mubr.msk.bf16.mxu1 %vm388_vm0, %v509_v49  ;;  %v666_v62 = vld [vmem:[%s883_s1 + $0x1c0] ss:$16 sps:$4 sm:$0xff]   ;;  %v667_v63 = vld [vmem:[%s883_s1 + $0x1c8] ss:$16 sps:$4 sm:$0xff]  }
  0x17   :  { %403 = vmatpush1.bf16.msra.mxu0 %v612_v23  ;;  %444 = vmatpush1.bf16.msra.mxu1 %v613_v24 }
  0x18   :  { %404 = vmatprep.subr.bf16.mxu0 %v614_v25  ;;  %445 = vmatprep.subr.bf16.mxu1 %v616_v26 }
  0x1b   :  { %405 = vmatpush1.bf16.msra.mxu0 %v618_v27  ;;  %446 = vmatpush1.bf16.msra.mxu1 %v619_v28 }
  0x1c   :  { %406 = vmatprep.subr.bf16.mxu0 %v620_v29  ;;  %447 = vmatprep.subr.bf16.mxu1 %v622_v30 }
  0x1f   :  { %407 = vmatpush1.bf16.msra.mxu0 %v624_v31  ;;  %448 = vmatpush1.bf16.msra.mxu1 %v625_v32 }
  0x20   :  { %408 = vmatprep.subr.bf16.mxu0 %v626_v33  ;;  %449 = vmatprep.subr.bf16.mxu1 %v628_v34 }
  0x23   :  { %409 = vmatpush1.bf16.msra.mxu0 %v630_v35  ;;  %450 = vmatpush1.bf16.msra.mxu1 %v631_v36 }
  0x24   :  { %410 = vmatprep.subr.bf16.mxu0 %v632_v37  ;;  %451 = vmatprep.subr.bf16.mxu1 %v634_v38 }
  0x27   :  { %411 = vmatpush1.bf16.msra.mxu0 %v636_v39  ;;  %452 = vmatpush1.bf16.msra.mxu1 %v637_v40 }
  0x28   :  { %412 = vmatprep.subr.bf16.mxu0 %v638_v41  ;;  %453 = vmatprep.subr.bf16.mxu1 %v640_v42 }
  0x2b   :  { %413 = vmatpush1.bf16.msra.mxu0 %v642_v43  ;;  %454 = vmatpush1.bf16.msra.mxu1 %v643_v44 }
  0x2c   :  { %414 = vmatprep.subr.bf16.mxu0 %v644_v47  ;;  %455 = vmatprep.subr.bf16.mxu1 %v646_v48 }
  0x2f   :  { %415 = vmatpush1.bf16.msra.mxu0 %v648_v50  ;;  %456 = vmatpush1.bf16.msra.mxu1 %v649_v51 }
  0x30   :  { %416 = vmatprep.subr.bf16.mxu0 %v650_v52  ;;  %457 = vmatprep.subr.bf16.mxu1 %v652_v53 }
  0x33   :  { %417 = vmatpush1.bf16.msra.mxu0 %v654_v54  ;;  %458 = vmatpush1.bf16.msra.mxu1 %v655_v55 }
  0x34   :  { %418 = vmatprep.subr.bf16.mxu0 %v656_v56  ;;  %459 = vmatprep.subr.bf16.mxu1 %v658_v57 }
  0x37   :  { %419 = vmatpush1.bf16.msra.mxu0 %v660_v58  ;;  %460 = vmatpush1.bf16.msra.mxu1 %v661_v59 }
  0x38   :  { %420 = vmatprep.subr.bf16.mxu0 %v662_v60  ;;  %461 = vmatprep.subr.bf16.mxu1 %v664_v61 }
  0x3b   :  { %421 = vmatpush1.bf16.msra.mxu0 %v666_v62  ;;  %462 = vmatpush1.bf16.msra.mxu1 %v667_v63 }
  0x3e   :  { %425 = vmatmul.mubr.bf16.vlgmr.msra.gmra.mrb[0].mxu0 %v508_v0  ;;  %466 = vmatmul.mubr.bf16.vlgmr.msra.gmra.mrb[0].mxu1 %v508_v0 }
  0x91   :  { %v80_v1 = vpop.permute.xlu0 %79 }
 0x111   :  { %v426_v2 = vpop.f32.mrb[0].mxu0  ;;  %v467_v3 = vpop.f32.mrb[0].mxu1 }
 0x112   :  { %v427_v4 = vadd.f32 %v426_v2, %v80_v1  ;;  %v468_v5 = vadd.f32 %v467_v3, %v80_v1  ;;  %v428_v6 = vpop.f32.mrb[1].mxu0  ;;  %v469_v7 = vpop.f32.mrb[1].mxu1 }
 0x113   :  { %v429_v8 = vadd.f32 %v428_v6, %v80_v1  ;;  %v470_v9 = vadd.f32 %v469_v7, %v80_v1  ;;  %v430_v10 = vpop.f32.mrb[2].mxu0  ;;  %v471_v11 = vpop.f32.mrb[2].mxu1 }
 0x114   :  { %vm474_vm1 = vcmp.ge.f32.partialorder %v427_v4, 0.0  ;;  %v478_v12 = vmul.f32 0.2, %v427_v4  ;;  %vm476_vm2 = vcmp.ge.f32.partialorder %v468_v5, 0.0  ;;  %v480_v13 = vmul.f32 0.2, %v468_v5 }
 0x115   :  { %vm475_vm3 = vcmp.ge.f32.partialorder %v429_v8, 0.0  ;;  %v479_v14 = vmul.f32 0.2, %v429_v8  ;;  %vm477_vm4 = vcmp.ge.f32.partialorder %v470_v9, 0.0  ;;  %v481_v15 = vmul.f32 0.2, %v470_v9 }
 0x116   :  { %v482_v16 = vsel %vm474_vm1, %v427_v4, %v478_v12  ;;  %v484_v17 = vsel %vm476_vm2, %v468_v5, %v480_v13  ;;  %v431_v18 = vpop.f32.mrb[3].mxu0  ;;  %v472_v19 = vpop.f32.mrb[3].mxu1 }
 0x117   :  { %v483_v20 = vsel %vm475_vm3, %v429_v8, %v479_v14  ;;  %v485_v21 = vsel %vm477_vm4, %v470_v9, %v481_v15 }
 0x118   :  { %v574_v22 = vpack.c.bf16 %v483_v20, %v482_v16  ;;  %v575_v23 = vpack.c.bf16 %v485_v21, %v484_v17 }
 0x11a   :  { %502 = vst [vmem:[%s886_s3] sm:$0xff] %v574_v22  ;;  %503 = vst [vmem:[%s886_s3 + $0x8] sm:$0xff] %v575_v23 }

// kernel: hiflc_forward.7
= control target key start
LH: loop header
LB: loop body
LE: loop exit
PB: predicated region body
PF: predicated region fallthrough
CT: control target
= control target key end

     0   :  { %v220_v0 = vmov 0.0   ;;  %vm221_vm0 = vmmov 0   ;;  %v222_v2 = vmov 0   ;;  %s279_s1 = inlined_call_operand.vmem [shape: bf16[128,128], index: 1, kind: input, shape index: {}]   ;;  %s280_s2 = inlined_call_operand.vmem [shape: f32[16,1], index: 2, kind: input, shape index: {}]   ;;  %s281_s0 = inlined_call_operand.vmem [shape: bf16[16,128], index: 0, kind: input, shape index: {}]   ;;  %s282_s3 = inlined_call_operand.vmem [shape: bf16[16,128], index: 3, kind: output, shape index: {}]  }
   0x1   :  { %187 = vmatprep.subr.bf16.mxu0 %v220_v0  ;;  %v211_v1 = vld [vmem:[%s279_s1] sm:$0xff]   ;;  %203 = vmatprep.mubr.msk.bf16.mxu0 %vm221_vm0, %v220_v0  ;;  %v212_v3 = vld [vmem:[%s279_s1 + $0x8] sm:$0xff]   ;;  %v213_v4 = vld [vmem:[%s279_s1 + $0x10] sm:$0xff]  }
   0x2   :  { %210 = vset.pattern.permute.xlu0 %v222_v2  ;;  %188 = vmatpush3.bf16.msra.mxu0 %v211_v1  ;;  %v33_v5 = vld [vmem:[%s280_s2] sm:$0xff]  ;;  %v214_v6 = vld [vmem:[%s279_s1 + $0x18] sm:$0xff]   ;;  %v34_v7 = vld [vmem:[%s280_s2 + $0x8] sm:$0xff] }
   0x3   :  { %189 = vmatprep.subr.bf16.mxu0 %v220_v0  ;;  %37 = vperm.xlu0 %210, %v33_v5   ;;  %v215_v8 = vld [vmem:[%s279_s1 + $0x20] sm:$0xff]   ;;  %v216_v9 = vld [vmem:[%s279_s1 + $0x28] sm:$0xff]   ;;  %v217_v10 = vld [vmem:[%s279_s1 + $0x30] sm:$0xff]  }
   0x4   :  { %v218_v11 = vld [vmem:[%s279_s1 + $0x38] sm:$0xff]   ;;  %v219_v12 = vld [vmem:[%s281_s0] sm:$0xff]  }
   0x6   :  { %190 = vmatpush3.bf16.msra.mxu0 %v212_v3 }
   0x7   :  { %191 = vmatprep.subr.bf16.mxu0 %v220_v0  ;;  %42 = vperm.xlu0 %210, %v34_v7  }
   0xa   :  { %192 = vmatpush3.bf16.msra.mxu0 %v213_v4 }
   0xb   :  { %193 = vmatprep.subr.bf16.mxu0 %v220_v0 }
   0xe   :  { %194 = vmatpush3.bf16.msra.mxu0 %v214_v6 }
   0xf   :  { %195 = vmatprep.subr.bf16.mxu0 %v220_v0 }
  0x12   :  { %196 = vmatpush3.bf16.msra.mxu0 %v215_v8 }
  0x13   :  { %197 = vmatprep.subr.bf16.mxu0 %v220_v0 }
  0x16   :  { %198 = vmatpush3.bf16.msra.mxu0 %v216_v9 }
  0x17   :  { %199 = vmatprep.subr.bf16.mxu0 %v220_v0 }
  0x1a   :  { %200 = vmatpush3.bf16.msra.mxu0 %v217_v10 }
  0x1b   :  { %201 = vmatprep.subr.bf16.mxu0 %v220_v0 }
  0x1e   :  { %202 = vmatpush3.bf16.msra.mxu0 %v218_v11 }
  0x21   :  { %204 = vmatmul.mubr.bf16.vlgmr.msra.gmra.mrb[0].mxu0 %v219_v12 }
  0x82   :  { %v38_v13 = vpop.permute.xlu0 %37 }
  0x86   :  { %v43_v17 = vpop.permute.xlu0 %42 }
  0xf4   :  { %v133_v14 = vpop.f32.mrb[0].mxu0 }
  0xf5   :  { %v134_v15 = vadd.f32 %v133_v14, %v38_v13  ;;  %v205_v16 = vpop.f32.mrb[1].mxu0 }
  0xf6   :  { %v136_v18 = vpop.f32.mrb[2].mxu0 }
  0xf7   :  { %v142_v19 = vmul.f32 0.2, %v134_v15  ;;  %v137_v20 = vadd.f32 %v136_v18, %v43_v17  ;;  %v206_v21 = vpop.f32.mrb[3].mxu0  ;;  %vm140_vm1 = vcmp.ge.f32.partialorder %v134_v15, 0.0 }
  0xf9   :  { %vm141_vm2 = vcmp.ge.f32.partialorder %v137_v20, 0.0  ;;  %v143_v22 = vmul.f32 0.2, %v137_v20  ;;  %v144_v23 = vsel %vm140_vm1, %v134_v15, %v142_v19 }
  0xfb   :  { %v145_v24 = vsel %vm141_vm2, %v137_v20, %v143_v22 }
  0xfc   :  { %v176_v25 = vpack.c.bf16 %v145_v24, %v144_v23 }
  0xfe   :  { %177 = vst [vmem:[%s282_s3] sm:$0xff] %v176_v25  }

// kernel: hiflc_forward.8
= control target key start
LH: loop header
LB: loop body
LE: loop exit
PB: predicated region body
PF: predicated region fallthrough
CT: control target
= control target key end

     0   :  { %v384_v1 = vmov 0   ;;  %s483_s1 = inlined_call_operand.vmem [shape: bf16[256,128], index: 1, kind: input, shape index: {}]   ;;  %s484_s0 = inlined_call_operand.vmem [shape: bf16[32,256], index: 0, kind: input, shape index: {}]   ;;  %s485_s2 = inlined_call_operand.vmem [shape: f32[32,1], index: 2, kind: input, shape index: {}]   ;;  %s486_s3 = inlined_call_operand.vmem [shape: bf16[32,128], index: 3, kind: output, shape index: {}]  }
   0x1   :  { %v362_v0 = vld [vmem:[%s483_s1 + $0x40] sm:$0xff]   ;;  %361 = vset.pattern.permute.xlu1 %v384_v1  ;;  %360 = vset.pattern.permute.xlu0 %v384_v1  ;;  %v364_v3 = vld [vmem:[%s483_s1 + $0x48] sm:$0xff]   ;;  %v366_v5 = vld [vmem:[%s483_s1 + $0x50] sm:$0xff]  }
   0x2   :  { %v363_v2 = vld [vmem:[%s483_s1] sm:$0xff]   ;;  %315 = vmatprep.subr.bf16.mxu0 %v362_v0  ;;  %343 = vmatprep.subr.bf16.mxu1 %v362_v0  ;;  %v365_v4 = vld [vmem:[%s483_s1 + $0x8] sm:$0xff]   ;;  %v367_v6 = vld [vmem:[%s483_s1 + $0x10] sm:$0xff]  }
   0x3   :  { %316 = vmatpush3.bf16.msra.mxu0 %v363_v2  ;;  %351 = vmatpush3.bf16.msra.mxu1 %v363_v2  ;;  %v368_v7 = vld [vmem:[%s483_s1 + $0x58] sm:$0xff]   ;;  %v370_v9 = vld [vmem:[%s483_s1 + $0x60] sm:$0xff]   ;;  %v372_v11 = vld [vmem:[%s483_s1 + $0x68] sm:$0xff]  }
   0x4   :  { %317 = vmatprep.subr.bf16.mxu0 %v364_v3  ;;  %344 = vmatprep.subr.bf16.mxu1 %v364_v3  ;;  %v369_v8 = vld [vmem:[%s483_s1 + $0x18] sm:$0xff]   ;;  %v371_v10 = vld [vmem:[%s483_s1 + $0x20] sm:$0xff]   ;;  %v373_v14 = vld [vmem:[%s483_s1 + $0x28] sm:$0xff]  }
   0x5   :  { %v380_v12 = vld [vmem:[%s484_s0 + $0x4] ss:$8 sps:$4 sm:$0xff]   ;;  %v383_v13 = vld [vmem:[%s484_s0 + $0x14] ss:$8 sps:$4 sm:$0xff]   ;;  %v378_v23 = vld [vmem:[%s484_s0] ss:$8 sps:$4 sm:$0xff]  }
   0x6   :  { %v53_v15 = vld [vmem:[%s485_s2 + $0x10] sm:$0xff]  ;;  %v51_v16 = vld [vmem:[%s485_s2] sm:$0xff]  ;;  %223 = vmatprep.mubr.bf16.mxu0 %v380_v12  ;;  %231 = vmatprep.mubr.bf16.mxu1 %v383_v13  ;;  %v54_v19 = vld [vmem:[%s485_s2 + $0x18] sm:$0xff] }
   0x7   :  { %318 = vmatpush3.bf16.msra.mxu0 %v365_v4  ;;  %352 = vmatpush3.bf16.msra.mxu1 %v365_v4  ;;  %v374_v17 = vld [vmem:[%s483_s1 + $0x70] sm:$0xff]   ;;  %v52_v20 = vld [vmem:[%s485_s2 + $0x8] sm:$0xff]  ;;  %v376_v21 = vld [vmem:[%s483_s1 + $0x78] sm:$0xff]  }
   0x8   :  { %319 = vmatprep.subr.bf16.mxu0 %v366_v5  ;;  %345 = vmatprep.subr.bf16.mxu1 %v366_v5  ;;  %v375_v18 = vld [vmem:[%s483_s1 + $0x30] sm:$0xff]   ;;  %v377_v22 = vld [vmem:[%s483_s1 + $0x38] sm:$0xff]  }
   0x9   :  { %67 = vperm.xlu1 %361, %v53_v15   ;;  %57 = vperm.xlu0 %360, %v51_v16   ;;  %v381_v24 = vld [vmem:[%s484_s0 + $0x10] ss:$8 sps:$4 sm:$0xff]  }
   0xb   :  { %320 = vmatpush3.bf16.msra.mxu0 %v367_v6  ;;  %353 = vmatpush3.bf16.msra.mxu1 %v367_v6 }
   0xc   :  { %321 = vmatprep.subr.bf16.mxu0 %v368_v7  ;;  %346 = vmatprep.subr.bf16.mxu1 %v368_v7 }
   0xd   :  { %72 = vperm.xlu1 %361, %v54_v19   ;;  %62 = vperm.xlu0 %360, %v52_v20  }
   0xf   :  { %322 = vmatpush3.bf16.msra.mxu0 %v369_v8  ;;  %354 = vmatpush3.bf16.msra.mxu1 %v369_v8 }
  0x10   :  { %323 = vmatprep.subr.bf16.mxu0 %v370_v9  ;;  %347 = vmatprep.subr.bf16.mxu1 %v370_v9 }
  0x13   :  { %324 = vmatpush3.bf16.msra.mxu0 %v371_v10  ;;  %355 = vmatpush3.bf16.msra.mxu1 %v371_v10 }
  0x14   :  { %325 = vmatprep.subr.bf16.mxu0 %v372_v11  ;;  %348 = vmatprep.subr.bf16.mxu1 %v372_v11 }
  0x17   :  { %326 = vmatpush3.bf16.msra.mxu0 %v373_v14  ;;  %356 = vmatpush3.bf16.msra.mxu1 %v373_v14 }
  0x18   :  { %327 = vmatprep.subr.bf16.mxu0 %v374_v17  ;;  %349 = vmatprep.subr.bf16.mxu1 %v374_v17 }
  0x1b   :  { %328 = vmatpush3.bf16.msra.mxu0 %v375_v18  ;;  %357 = vmatpush3.bf16.msra.mxu1 %v375_v18 }
  0x1c   :  { %329 = vmatprep.subr.bf16.mxu0 %v376_v21  ;;  %350 = vmatprep.subr.bf16.mxu1 %v376_v21 }
  0x1f   :  { %330 = vmatpush3.bf16.msra.mxu0 %v377_v22  ;;  %358 = vmatpush3.bf16.msra.mxu1 %v377_v22 }
  0x22   :  { %224 = vmatmul.mubr.bf16.vlgmr.msra.gmra.mrb[0].mxu0 %v378_v23  ;;  %232 = vmatmul.mubr.bf16.vlgmr.msra.gmra.mrb[0].mxu1 %v381_v24 }
  0x88   :  { %v68_v25 = vpop.permute.xlu1 %67  ;;  %v58_v26 = vpop.permute.xlu0 %57 }
  0x8c   :  { %v73_v41 = vpop.permute.xlu1 %72  ;;  %v63_v42 = vpop.permute.xlu0 %62 }
  0xf5   :  { %v331_v27 = vpop.f32.mrb[0].mxu0  ;;  %v337_v28 = vpop.f32.mrb[0].mxu1 }
  0xf6   :  { %v332_v29 = vpop.f32.mrb[1].mxu0  ;;  %v338_v30 = vpop.f32.mrb[1].mxu1 }
  0xf7   :  { %v333_v31 = vadd.f32 %v332_v29, %v331_v27  ;;  %v339_v32 = vadd.f32 %v338_v30, %v337_v28  ;;  %v334_v33 = vpop.f32.mrb[2].mxu0  ;;  %v340_v34 = vpop.f32.mrb[2].mxu1 }
  0xf8   :  { %v335_v35 = vpop.f32.mrb[3].mxu0  ;;  %v341_v36 = vpop.f32.mrb[3].mxu1 }
  0xf9   :  { %v226_v37 = vadd.f32 %v333_v31, %v58_v26  ;;  %v234_v38 = vadd.f32 %v339_v32, %v68_v25  ;;  %v336_v39 = vadd.f32 %v335_v35, %v334_v33  ;;  %v342_v40 = vadd.f32 %v341_v36, %v340_v34 }
  0xfb   :  { %v244_v43 = vmul.f32 0.2, %v226_v37  ;;  %v246_v44 = vmul.f32 0.2, %v234_v38  ;;  %v229_v45 = vadd.f32 %v336_v39, %v63_v42  ;;  %v237_v46 = vadd.f32 %v342_v40, %v73_v41 }
  0xfc   :  { %vm240_vm0 = vcmp.ge.f32.partialorder %v226_v37, 0.0  ;;  %vm242_vm1 = vcmp.ge.f32.partialorder %v234_v38, 0.0 }
  0xfd   :  { %vm241_vm2 = vcmp.ge.f32.partialorder %v229_v45, 0.0  ;;  %v245_v47 = vmul.f32 0.2, %v229_v45  ;;  %vm243_vm3 = vcmp.ge.f32.partialorder %v237_v46, 0.0  ;;  %v247_v48 = vmul.f32 0.2, %v237_v46 }
  0xfe   :  { %v248_v49 = vsel %vm240_vm0, %v226_v37, %v244_v43  ;;  %v250_v50 = vsel %vm242_vm1, %v234_v38, %v246_v44 }
  0xff   :  { %v249_v51 = vsel %vm241_vm2, %v229_v45, %v245_v47  ;;  %v251_v52 = vsel %vm243_vm3, %v237_v46, %v247_v48 }
 0x100   :  { %v307_v53 = vpack.c.bf16 %v249_v51, %v248_v49  ;;  %v312_v54 = vpack.c.bf16 %v251_v52, %v250_v50 }
 0x102   :  { %308 = vst [vmem:[%s486_s3] sm:$0xff] %v307_v53   ;;  %314 = vst [vmem:[%s486_s3 + $0x8] sm:$0xff] %v312_v54  }

// kernel: hiflc_forward.9
= control target key start
LH: loop header
LB: loop body
LE: loop exit
PB: predicated region body
PF: predicated region fallthrough
CT: control target
= control target key end

     0   :  { %v849_v1 = vmov 0   ;;  %s1081_s1 = inlined_call_operand.vmem [shape: bf16[512,128], index: 1, kind: input, shape index: {}]   ;;  %s1082_s4 = inlined_call_operand.<no memory space> [shape: f32[1,1], index: 4, kind: input, shape index: {}]   ;;  %s1083_s0 = inlined_call_operand.vmem [shape: bf16[64,512], index: 0, kind: input, shape index: {}]   ;;  %s1084_s2 = inlined_call_operand.vmem [shape: f32[64,1], index: 2, kind: input, shape index: {}]   ;;  %s1085_s3 = inlined_call_operand.vmem [shape: f32[64,1], index: 3, kind: input, shape index: {}]   ;;  %s1086_s5 = inlined_call_operand.vmem [shape: f32[1,128], index: 5, kind: output, shape index: {}]  }
   0x1   :  { %v793_v0 = vld [vmem:[%s1081_s1 + $0x40] sm:$0xff]   ;;  %791 = vset.pattern.permute.xlu0 %v849_v1  ;;  %792 = vset.pattern.permute.xlu1 %v849_v1  ;;  %v10_v2 = vstv %s1082_s4  ;;  %v797_v6 = vld [vmem:[%s1081_s1 + $0x48] sm:$0xff]   ;;  %v801_v10 = vld [vmem:[%s1081_s1 + $0x50] sm:$0xff]  }
   0x2   :  { %v794_v3 = vld [vmem:[%s1081_s1 + $0xc0] sm:$0xff]   ;;  %11 = vst [vmem:[#allocation2] sm:$0x1] %v10_v2  ;;  %710 = vmatprep.subr.bf16.mxu0 %v793_v0  ;;  %v798_v7 = vld [vmem:[%s1081_s1 + $0xc8] sm:$0xff]   ;;  %v802_v11 = vld [vmem:[%s1081_s1 + $0xd0] sm:$0xff]  }
   0x3   :  { %v795_v4 = vld [vmem:[%s1081_s1] sm:$0xff]   ;;  %750 = vmatprep.subr.bf16.mxu1 %v794_v3  ;;  %v799_v8 = vld [vmem:[%s1081_s1 + $0x8] sm:$0xff]   ;;  %v803_v12 = vld [vmem:[%s1081_s1 + $0x10] sm:$0xff]  }
   0x4   :  { %v796_v5 = vld [vmem:[%s1081_s1 + $0x80] sm:$0xff]   ;;  %711 = vmatpush3.bf16.msra.mxu0 %v795_v4  ;;  %v800_v9 = vld [vmem:[%s1081_s1 + $0x88] sm:$0xff]   ;;  %v804_v13 = vld [vmem:[%s1081_s1 + $0x90] sm:$0xff]  }
   0x5   :  { %751 = vmatpush3.bf16.msra.mxu1 %v796_v5  ;;  %712 = vmatprep.subr.bf16.mxu0 %v797_v6  ;;  %v805_v14 = vld [vmem:[%s1081_s1 + $0x58] sm:$0xff]   ;;  %v809_v18 = vld [vmem:[%s1081_s1 + $0x60] sm:$0xff]   ;;  %v813_v22 = vld [vmem:[%s1081_s1 + $0x68] sm:$0xff]  }
   0x6   :  { %752 = vmatprep.subr.bf16.mxu1 %v798_v7  ;;  %v806_v15 = vld [vmem:[%s1081_s1 + $0xd8] sm:$0xff]   ;;  %v810_v19 = vld [vmem:[%s1081_s1 + $0xe0] sm:$0xff]   ;;  %v814_v23 = vld [vmem:[%s1081_s1 + $0xe8] sm:$0xff]  }
   0x7   :  { %v807_v16 = vld [vmem:[%s1081_s1 + $0x18] sm:$0xff]   ;;  %v811_v20 = vld [vmem:[%s1081_s1 + $0x20] sm:$0xff]   ;;  %v815_v24 = vld [vmem:[%s1081_s1 + $0x28] sm:$0xff]  }
   0x8   :  { %713 = vmatpush3.bf16.msra.mxu0 %v799_v8  ;;  %v808_v17 = vld [vmem:[%s1081_s1 + $0x98] sm:$0xff]   ;;  %v812_v21 = vld [vmem:[%s1081_s1 + $0xa0] sm:$0xff]   ;;  %v816_v25 = vld [vmem:[%s1081_s1 + $0xa8] sm:$0xff]  }
   0x9   :  { %753 = vmatpush3.bf16.msra.mxu1 %v800_v9  ;;  %714 = vmatprep.subr.bf16.mxu0 %v801_v10  ;;  %v817_v26 = vld [vmem:[%s1081_s1 + $0x70] sm:$0xff]   ;;  %v821_v30 = vld [vmem:[%s1081_s1 + $0x78] sm:$0xff]   ;;  %v103_v44 = vld [vmem:[%s1084_s2] sm:$0xff] }
   0xa   :  { %754 = vmatprep.subr.bf16.mxu1 %v802_v11  ;;  %v818_v27 = vld [vmem:[%s1081_s1 + $0xf0] sm:$0xff]   ;;  %v822_v31 = vld [vmem:[%s1081_s1 + $0xf8] sm:$0xff]   ;;  %113 = vperm.xlu0 %791, %v103_v44   ;;  %v104_v46 = vld [vmem:[%s1084_s2 + $0x8] sm:$0xff] }
   0xb   :  { %v819_v28 = vld [vmem:[%s1081_s1 + $0x30] sm:$0xff]   ;;  %v823_v32 = vld [vmem:[%s1081_s1 + $0x38] sm:$0xff]   ;;  %v107_v49 = vld [vmem:[%s1084_s2 + $0x20] sm:$0xff] }
   0xc   :  { %715 = vmatpush3.bf16.msra.mxu0 %v803_v12  ;;  %v820_v29 = vld [vmem:[%s1081_s1 + $0xb0] sm:$0xff]   ;;  %v824_v33 = vld [vmem:[%s1081_s1 + $0xb8] sm:$0xff]   ;;  %v577_v52 = vld [vmem:[%s1085_s3] sm:$0xff] }
   0xd   :  { %755 = vmatpush3.bf16.msra.mxu1 %v804_v13  ;;  %716 = vmatprep.subr.bf16.mxu0 %v805_v14  ;;  %v825_v34 = vld [vmem:[%s1083_s0] ss:$16 sps:$4 sm:$0xff]   ;;  %v827_v35 = vld [vmem:[%s1083_s0 + $0x4] ss:$16 sps:$4 sm:$0xff]   ;;  %v828_v36 = vld [vmem:[%s1083_s0 + $0x8] ss:$16 sps:$4 sm:$0xff]  }
   0xe   :  { %756 = vmatprep.subr.bf16.mxu1 %v806_v15  ;;  %v830_v37 = vld [vmem:[%s1083_s0 + $0xc] ss:$16 sps:$4 sm:$0xff]   ;;  %455 = vmatprep.mubr.bf16.mxu0 %v827_v35  ;;  %v831_v38 = vld [vmem:[%s1083_s0 + $0x24] ss:$16 sps:$4 sm:$0xff]   ;;  %v835_v40 = vld [vmem:[%s1083_s0 + $0x20] ss:$16 sps:$4 sm:$0xff]  }
   0xf   :  { %520 = vmatprep.mubr.bf16.mxu1 %v830_v37  ;;  %v833_v39 = vld [vmem:[%s1083_s0 + $0x2c] ss:$16 sps:$4 sm:$0xff]   ;;  %v836_v41 = vld [vmem:[%s1083_s0 + $0x28] ss:$16 sps:$4 sm:$0xff]   ;;  %v837_v42 = vld [vmem:[%s1083_s0 + $0x44] ss:$16 sps:$4 sm:$0xff]   ;;  %118 = vperm.xlu0 %791, %v104_v46  }
  0x10   :  { %717 = vmatpush3.bf16.msra.mxu0 %v807_v16  ;;  %v839_v43 = vld [vmem:[%s1083_s0 + $0x4c] ss:$16 sps:$4 sm:$0xff]   ;;  %v105_v45 = vld [vmem:[%s1084_s2 + $0x10] sm:$0xff]  ;;  %v842_v50 = vld [vmem:[%s1083_s0 + $0x48] ss:$16 sps:$4 sm:$0xff]  }
  0x11   :  { %757 = vmatpush3.bf16.msra.mxu1 %v808_v17  ;;  %718 = vmatprep.subr.bf16.mxu0 %v809_v18  ;;  %v106_v47 = vld [vmem:[%s1084_s2 + $0x18] sm:$0xff]  ;;  %v841_v48 = vld [vmem:[%s1083_s0 + $0x40] ss:$16 sps:$4 sm:$0xff]   ;;  %v843_v51 = vld [vmem:[%s1083_s0 + $0x64] ss:$16 sps:$4 sm:$0xff]  }
  0x12   :  { %758 = vmatprep.subr.bf16.mxu1 %v810_v19  ;;  %123 = vperm.xlu1 %792, %v105_v45   ;;  %v845_v53 = vld [vmem:[%s1083_s0 + $0x6c] ss:$16 sps:$4 sm:$0xff]   ;;  %v847_v56 = vld [vmem:[%s1083_s0 + $0x60] ss:$16 sps:$4 sm:$0xff]   ;;  %v848_v58 = vld [vmem:[%s1083_s0 + $0x68] ss:$16 sps:$4 sm:$0xff]  }
  0x13   :  { %133 = vperm.xlu0 %791, %v107_v49   ;;  %v578_v54 = vld [vmem:[%s1085_s3 + $0x8] sm:$0xff]  ;;  %v579_v57 = vld [vmem:[%s1085_s3 + $0x10] sm:$0xff]  ;;  %v580_v60 = vld [vmem:[%s1085_s3 + $0x18] sm:$0xff] }
  0x14   :  { %719 = vmatpush3.bf16.msra.mxu0 %v811_v20  ;;  %v108_v55 = vld [vmem:[%s1084_s2 + $0x28] sm:$0xff]  ;;  %v109_v59 = vld [vmem:[%s1084_s2 + $0x30] sm:$0xff]  ;;  %v110_v61 = vld [vmem:[%s1084_s2 + $0x38] sm:$0xff] }
  0x15   :  { %759 = vmatpush3.bf16.msra.mxu1 %v812_v21  ;;  %720 = vmatprep.subr.bf16.mxu0 %v813_v22  ;;  %v581_v62 = vld [vmem:[%s1085_s3 + $0x20] sm:$0xff]  ;;  %v582_v63 = vld [vmem:[%s1085_s3 + $0x28] sm:$0xff]  ;;  %v583_v0 = vld [vmem:[%s1085_s3 + $0x30] sm:$0xff] }
  0x16   :  { %760 = vmatprep.subr.bf16.mxu1 %v814_v23  ;;  %128 = vperm.xlu1 %792, %v106_v47   ;;  %v584_v1 = vld [vmem:[%s1085_s3 + $0x38] sm:$0xff]  ;;  %v646_v2 = vld [vmem:[#allocation2] sm:$0x1] }
  0x17   :  { %592 = vperm.xlu0 %791, %v578_v54  }
  0x18   :  { %721 = vmatpush3.bf16.msra.mxu0 %v815_v24 }
  0x19   :  { %761 = vmatpush3.bf16.msra.mxu1 %v816_v25  ;;  %722 = vmatprep.subr.bf16.mxu0 %v817_v26 }
  0x1a   :  { %762 = vmatprep.subr.bf16.mxu1 %v818_v27  ;;  %587 = vperm.xlu1 %792, %v577_v52  }
  0x1b   :  { %597 = vperm.xlu0 %791, %v579_v57  }
  0x1c   :  { %723 = vmatpush3.bf16.msra.mxu0 %v819_v28 }
  0x1d   :  { %763 = vmatpush3.bf16.msra.mxu1 %v820_v29  ;;  %724 = vmatprep.subr.bf16.mxu0 %v821_v30 }
  0x1e   :  { %764 = vmatprep.subr.bf16.mxu1 %v822_v31  ;;  %138 = vperm.xlu1 %792, %v108_v55  }
  0x1f   :  { %602 = vperm.xlu0 %791, %v580_v60  }
  0x20   :  { %725 = vmatpush3.bf16.msra.mxu0 %v823_v32 }
  0x21   :  { %765 = vmatpush3.bf16.msra.mxu1 %v824_v33 }
  0x22   :  { %143 = vperm.xlu1 %792, %v109_v59  }
  0x23   :  { %456 = vmatmul.mubr.bf16.vlgmr.msra.gmra.mrb[0].mxu0 %v825_v34  ;;  %607 = vperm.xlu0 %791, %v581_v62  }
  0x24   :  { %521 = vmatmul.mubr.bf16.vlgmr.msra.gmra.mrb[0].mxu1 %v828_v36  ;;  %463 = vmatprep.mubr.bf16.mxu0 %v831_v38 }
  0x25   :  { %528 = vmatprep.mubr.bf16.mxu1 %v833_v39 }
  0x26   :  { %148 = vperm.xlu1 %792, %v110_v61  }
  0x27   :  { %617 = vperm.xlu0 %791, %v583_v0  }
  0x2a   :  { %612 = vperm.xlu1 %792, %v582_v63  }
  0x2b   :  { %464 = vmatmul.mubr.bf16.gmra.mrb[4].mxu0 %v835_v40  ;;  %649 = vperm.xlu0 %791, %v646_v2  }
  0x2c   :  { %529 = vmatmul.mubr.bf16.gmra.mrb[4].mxu1 %v836_v41  ;;  %471 = vmatprep.mubr.bf16.mxu0 %v837_v42 }
  0x2d   :  { %536 = vmatprep.mubr.bf16.mxu1 %v839_v43 }
  0x2e   :  { %622 = vperm.xlu1 %792, %v584_v1  }
  0x33   :  { %472 = vmatmul.mubr.bf16.gmra.mrb[8].mxu0 %v841_v48 }
  0x34   :  { %537 = vmatmul.mubr.bf16.gmra.mrb[8].mxu1 %v842_v50  ;;  %479 = vmatprep.mubr.bf16.mxu0 %v843_v51 }
  0x35   :  { %544 = vmatprep.mubr.bf16.mxu1 %v845_v53 }
  0x3b   :  { %480 = vmatmul.mubr.bf16.gmra.mrb[12].mxu0 %v847_v56 }
  0x3c   :  { %545 = vmatmul.mubr.bf16.gmra.mrb[12].mxu1 %v848_v58 }
  0x89   :  { %v114_v3 = vpop.permute.xlu0 %113 }
  0x8e   :  { %v119_v5 = vpop.permute.xlu0 %118 }
  0x91   :  { %v124_v4 = vpop.permute.xlu1 %123 }
  0x92   :  { %v1075_v7 = vpop.permute.xlu0 %133 }
  0x95   :  { %v129_v6 = vpop.permute.xlu1 %128 }
  0x96   :  { %v593_v9 = vpop.permute.xlu0 %592 }
  0x99   :  { %v588_v8 = vpop.permute.xlu1 %587 }
  0x9a   :  { %v598_v26 = vpop.permute.xlu0 %597 }
  0x9d   :  { %v139_v25 = vpop.permute.xlu1 %138 }
  0x9e   :  { %v603_v51 = vpop.permute.xlu0 %602 }
  0xa1   :  { %v144_v49 = vpop.permute.xlu1 %143 }
  0xf6   :  { %v726_v10 = vpop.f32.mrb[0].mxu0 }
  0xf7   :  { %v766_v11 = vpop.f32.mrb[0].mxu1  ;;  %v727_v12 = vpop.f32.mrb[1].mxu0 }
  0xf8   :  { %v728_v13 = vadd.f32 %v727_v12, %v726_v10  ;;  %v767_v14 = vpop.f32.mrb[1].mxu1  ;;  %v729_v15 = vpop.f32.mrb[2].mxu0 }
  0xf9   :  { %v768_v16 = vadd.f32 %v767_v14, %v766_v11  ;;  %v769_v17 = vpop.f32.mrb[2].mxu1  ;;  %v730_v18 = vpop.f32.mrb[3].mxu0 }
  0xfa   :  { %v458_v19 = vadd.f32 %v728_v13, %v114_v3  ;;  %v731_v20 = vadd.f32 %v730_v18, %v729_v15  ;;  %v770_v21 = vpop.f32.mrb[3].mxu1  ;;  %v149_v10 = vpop.permute.xlu1 %148 }
  0xfb   :  { %v771_v22 = vadd.f32 %v770_v21, %v769_v17  ;;  %v608_v14 = vpop.permute.xlu0 %607 }
  0xfc   :  { %v523_v23 = vadd.f32 %v768_v16, %v458_v19  ;;  %v461_v24 = vadd.f32 %v731_v20, %v119_v5 }
  0xfe   :  { %vm553_vm0 = vcmp.ge.f32.partialorder %v523_v23, 0.0  ;;  %v561_v27 = vmul.f32 0.2, %v523_v23  ;;  %v526_v28 = vadd.f32 %v771_v22, %v461_v24  ;;  %v732_v29 = vpop.f32.mrb[4].mxu0 }
  0xff   :  { %v772_v30 = vpop.f32.mrb[4].mxu1  ;;  %v733_v31 = vpop.f32.mrb[5].mxu0 }
 0x100   :  { %v569_v32 = vsel %vm553_vm0, %v523_v23, %v561_v27  ;;  %vm554_vm1 = vcmp.ge.f32.partialorder %v526_v28, 0.0  ;;  %v562_v33 = vmul.f32 0.2, %v526_v28  ;;  %v734_v34 = vadd.f32 %v733_v31, %v732_v29  ;;  %v773_v35 = vpop.f32.mrb[5].mxu1  ;;  %v735_v36 = vpop.f32.mrb[6].mxu0 }
 0x101   :  { %v774_v37 = vadd.f32 %v773_v35, %v772_v30  ;;  %v775_v38 = vpop.f32.mrb[6].mxu1  ;;  %v736_v39 = vpop.f32.mrb[7].mxu0  ;;  %v625_v44 = vmul.f32 %v588_v8, %v569_v32 }
 0x102   :  { %v570_v40 = vsel %vm554_vm1, %v526_v28, %v562_v33  ;;  %v466_v41 = vadd.f32 %v734_v34, %v124_v4  ;;  %v737_v42 = vadd.f32 %v736_v39, %v735_v36  ;;  %v776_v43 = vpop.f32.mrb[7].mxu1  ;;  %v613_v29 = vpop.permute.xlu1 %612 }
 0x103   :  { %v626_v45 = vmul.f32 %v593_v9, %v570_v40  ;;  %v777_v46 = vadd.f32 %v776_v43, %v775_v38 }
 0x104   :  { %v531_v47 = vadd.f32 %v774_v37, %v466_v41  ;;  %v469_v48 = vadd.f32 %v737_v42, %v129_v6  ;;  %v618_v41 = vpop.permute.xlu0 %617 }
 0x105   :  { %v633_v50 = vadd.f32 %v626_v45, %v625_v44 }
 0x106   :  { %vm555_vm2 = vcmp.ge.f32.partialorder %v531_v47, 0.0  ;;  %v563_v52 = vmul.f32 0.2, %v531_v47  ;;  %v534_v53 = vadd.f32 %v777_v46, %v469_v48  ;;  %v738_v54 = vpop.f32.mrb[8].mxu0  ;;  %v623_v45 = vpop.permute.xlu1 %622 }
 0x107   :  { %v778_v55 = vpop.f32.mrb[8].mxu1  ;;  %v739_v56 = vpop.f32.mrb[9].mxu0 }
 0x108   :  { %v571_v57 = vsel %vm555_vm2, %v531_v47, %v563_v52  ;;  %vm556_vm3 = vcmp.ge.f32.partialorder %v534_v53, 0.0  ;;  %v564_v58 = vmul.f32 0.2, %v534_v53  ;;  %v740_v59 = vadd.f32 %v739_v56, %v738_v54  ;;  %v779_v60 = vpop.f32.mrb[9].mxu1  ;;  %v741_v61 = vpop.f32.mrb[10].mxu0 }
 0x109   :  { %v627_v62 = vmul.f32 %v598_v26, %v571_v57  ;;  %v780_v63 = vadd.f32 %v779_v60, %v778_v55  ;;  %v781_v0 = vpop.f32.mrb[10].mxu1  ;;  %v742_v1 = vpop.f32.mrb[11].mxu0 }
 0x10a   :  { %v572_v2 = vsel %vm556_vm3, %v534_v53, %v564_v58  ;;  %v474_v3 = vadd.f32 %v740_v59, %v1075_v7  ;;  %v743_v4 = vadd.f32 %v742_v1, %v741_v61  ;;  %v782_v5 = vpop.f32.mrb[11].mxu1  ;;  %v650_v57 = vpop.permute.xlu0 %649 }
 0x10b   :  { %v634_v6 = vadd.f32 %v633_v50, %v627_v62  ;;  %v628_v8 = vmul.f32 %v603_v51, %v572_v2  ;;  %v783_v9 = vadd.f32 %v782_v5, %v781_v0 }
 0x10c   :  { %v539_v11 = vadd.f32 %v780_v63, %v474_v3  ;;  %v477_v12 = vadd.f32 %v743_v4, %v139_v25 }
 0x10d   :  { %v635_v13 = vadd.f32 %v634_v6, %v628_v8 }
 0x10e   :  { %vm557_vm4 = vcmp.ge.f32.partialorder %v539_v11, 0.0  ;;  %v565_v15 = vmul.f32 0.2, %v539_v11  ;;  %v542_v16 = vadd.f32 %v783_v9, %v477_v12  ;;  %v744_v17 = vpop.f32.mrb[12].mxu0 }
 0x10f   :  { %v784_v18 = vpop.f32.mrb[12].mxu1  ;;  %v745_v19 = vpop.f32.mrb[13].mxu0 }
 0x110   :  { %v573_v20 = vsel %vm557_vm4, %v539_v11, %v565_v15  ;;  %vm558_vm5 = vcmp.ge.f32.partialorder %v542_v16, 0.0  ;;  %v566_v21 = vmul.f32 0.2, %v542_v16  ;;  %v746_v7 = vadd.f32 %v745_v19, %v744_v17  ;;  %v785_v22 = vpop.f32.mrb[13].mxu1  ;;  %v747_v23 = vpop.f32.mrb[14].mxu0 }
 0x111   :  { %v629_v24 = vmul.f32 %v608_v14, %v573_v20  ;;  %v786_v26 = vadd.f32 %v785_v22, %v784_v18  ;;  %v787_v27 = vpop.f32.mrb[14].mxu1  ;;  %v748_v28 = vpop.f32.mrb[15].mxu0 }
 0x112   :  { %v574_v25 = vsel %vm558_vm5, %v542_v16, %v566_v21  ;;  %v482_v30 = vadd.f32 %v746_v7, %v144_v49  ;;  %v749_v31 = vadd.f32 %v748_v28, %v747_v23  ;;  %v788_v32 = vpop.f32.mrb[15].mxu1  ;;  %v652_v49 = vlaneseq }
 0x113   :  { %v636_v33 = vadd.f32 %v635_v13, %v629_v24  ;;  %v630_v34 = vmul.f32 %v613_v29, %v574_v25  ;;  %v789_v35 = vadd.f32 %v788_v32, %v787_v27 }
 0x114   :  { %v547_v36 = vadd.f32 %v786_v26, %v482_v30  ;;  %v485_v37 = vadd.f32 %v749_v31, %v149_v10  ;;  %v653_v52 = vshrl.u32 %v652_v49, 7 }
 0x115   :  { %v637_v38 = vadd.f32 %v636_v33, %v630_v34 }
 0x116   :  { %vm559_vm6 = vcmp.ge.f32.partialorder %v547_v36, 0.0  ;;  %v567_v39 = vmul.f32 0.2, %v547_v36  ;;  %v550_v40 = vadd.f32 %v789_v35, %v485_v37  ;;  %v654_v55 = vsub.s32 0, %v653_v52 }
 0x118   :  { %v575_v42 = vsel %vm559_vm6, %v547_v36, %v567_v39  ;;  %vm560_vm7 = vcmp.ge.f32.partialorder %v550_v40, 0.0  ;;  %v568_v43 = vmul.f32 0.2, %v550_v40  ;;  %v655_v59 = vrot.slane %v650_v57, %v654_v55 }
 0x119   :  { %v631_v44 = vmul.f32 %v618_v41, %v575_v42 }
 0x11a   :  { %v576_v46 = vsel %vm560_vm7, %v550_v40, %v568_v43 }
 0x11b   :  { %v638_v47 = vadd.f32 %v637_v38, %v631_v44  ;;  %v632_v48 = vmul.f32 %v623_v45, %v576_v46 }
 0x11d   :  { %v639_v50 = vadd.f32 %v638_v47, %v632_v48 }
 0x11f   :  { %v640_v51 = vrot.slane %v639_v50, 4 }
 0x121   :  { %v641_v53 = vadd.f32 %v640_v51, %v639_v50 }
 0x123   :  { %v642_v54 = vrot.slane %v641_v53, 2 }
 0x125   :  { %v643_v56 = vadd.f32 %v642_v54, %v641_v53 }
 0x127   :  { %v644_v58 = vrot.slane %v643_v56, 1 }
 0x129   :  { %v645_v60 = vadd.f32 %v644_v58, %v643_v56 }
 0x12b   :  { %v656_v61 = vadd.f32 %v655_v59, %v645_v60 }
 0x12d   :  { %657 = vst [vmem:[%s1086_s5] sm:$0x1] %v656_v61 }

</bundles_post_ra>
